<compile_context>
chip_gen: v7x
topology: tpu7x:2x2x1
jax: 0.10.0
libtpu: 0.0.40
codegen_flags: <defaults>
</compile_context>

<pallas_src>
import functools

import jax
import jax.numpy as jnp
import numpy as np
from jax.experimental import pallas as pl
from jax.experimental.pallas import tpu as pltpu


def _round_up(x, m):
    return (x + m - 1) // m * m


def _detect_tpu_generation():
    try:
        kind = jax.devices()[0].device_kind.lower()
    except Exception:
        return "unknown"
    if "v5 lite" in kind or "v5e" in kind or "v5lite" in kind:
        return "v5e"
    if "v6" in kind or "trillium" in kind:
        return "v6e"
    if "v7" in kind:
        return "v7x"
    return "unknown"


_GEN = _detect_tpu_generation()
# (batch-tile cap, vmem_limit_bytes): v6e has 128 MiB VMEM and a 256-wide MXU
# -> bB up to 256; v5e has 128 MiB but a 128-wide MXU -> bB 128; v7x has only
# 64 MiB physical VMEM -> keep the conservative 48 MiB limit and bB 128.
_GEN_CONFIG = {
    "v5e": (128, 96 * 1024 * 1024),
    "v6e": (256, 96 * 1024 * 1024),
    "v7x": (128, 48 * 1024 * 1024),
}.get(_GEN, (128, 48 * 1024 * 1024))

# Above this padded vocab size the final linear is split out of the hop kernel.
_SPLIT_FINAL_VOCAB = 2048


# --------------------------------------------------------------------------- #
# Kernels
# --------------------------------------------------------------------------- #
def _memory_hops(se_ref, u0_ref, ta_ref, tc_ref, bias_ref):
    """Runs the n_hops memory hops; returns the final controller state u (f32).

    se_ref:   (n_hops+1, bB, T, Ep) bf16  BoW story embedding per table
    u0_ref:   (bB, Ep)              f32   BoW query embedding (table W_0)
    ta_ref:   (bB, T, Ep)           bf16  temporal-A embedding
    tc_ref:   (bB, T, Ep)           bf16  temporal-C embedding
    bias_ref: (bB, T)               f32   0 = real sentence, -1e30 = pad
    """
    n_hops = se_ref.shape[0] - 1

    u = u0_ref[...]                              # (bB, Ep) f32 hop accumulator
    ta = ta_ref[...].astype(jnp.float32)         # upcast once; VPU math in f32
    tc = tc_ref[...].astype(jnp.float32)
    bias = bias_ref[...]

    for k in range(n_hops):                      # static, unrolled
        # adjacent sharing: table k is m of hop k, table k+1 is c of hop k.
        m = se_ref[k].astype(jnp.float32) + ta       # (bB, T, Ep)
        c = se_ref[k + 1].astype(jnp.float32) + tc   # (bB, T, Ep)

        # attention scores: VPU multiply + lane reduce (no q=1 MXU matmul)
        score = jnp.sum(m * u[:, None, :], axis=-1) + bias        # (bB, T)

        # softmax over the memory axis (additive pad bias: no inf-inf NaN)
        score = score - jnp.max(score, axis=1, keepdims=True)
        p = jnp.exp(score)
        p = p * pl.reciprocal(jnp.sum(p, axis=1, keepdims=True), approx=True)

        # weighted memory readout: VPU multiply + sublane reduce
        o = jnp.sum(p[:, :, None] * c, axis=1)                    # (bB, Ep)
        u = u + o                                                 # u <- u + o
    return u


def memn2n_fused_kernel(se_ref, u0_ref, ta_ref, tc_ref, bias_ref,
                        wl_ref,    # (Ep, Vp) bf16  final weight, MXU (K, N)
                        out_ref):  # (bB, Vp) f32
    u = _memory_hops(se_ref, u0_ref, ta_ref, tc_ref, bias_ref)
    # a = linear_final(u) = u @ W_{n_hops}^T ; weight already transposed
    out_ref[...] = jnp.dot(u.astype(jnp.bfloat16), wl_ref[...],
                           preferred_element_type=jnp.float32)


def memn2n_hops_kernel(se_ref, u0_ref, ta_ref, tc_ref, bias_ref,
                       u_ref):     # (bB, Ep) f32
    u_ref[...] = _memory_hops(se_ref, u0_ref, ta_ref, tc_ref, bias_ref)


# --------------------------------------------------------------------------- #
# Wrapper
# --------------------------------------------------------------------------- #
@functools.partial(jax.jit, static_argnames=("pad_idx",))
def memn2n_forward(stories, queries, stories_idx, W, TA, TC, pad_idx=0):
    """Pallas MEMN2N forward (bow, adjacent, temporal). Returns (B, vocab)."""
    B, T, _ = stories.shape
    NH1, V, E = W.shape                   # NH1 = n_hops + 1
    n_hops = NH1 - 1

    # ---- lane-dense padding of embedding / vocab dims -----------------------
    Ep = _round_up(E, 128)
    Vp = _round_up(V, 128)
    W_p = jnp.pad(W, ((0, 0), (0, 0), (0, Ep - E)))      # (NH1, V, Ep) f32
    TA_p = jnp.pad(TA, ((0, 0), (0, Ep - E)))
    TC_p = jnp.pad(TC, ((0, 0), (0, Ep - E)))

    # ---- gather-based BoW encoding, one table at a time ----------------------
    # Embedding row pad_idx is zero, so pad tokens contribute nothing.
    # Per-table gather+sum keeps the largest intermediate at (B, T, n, Ep).
    se = jnp.stack(
        [jnp.take(W_p[k], stories, axis=0).sum(axis=2) for k in range(NH1)],
        axis=0)                                           # (NH1, B, T, Ep) f32
    u0 = jnp.take(W_p[0], queries, axis=0).sum(axis=1)    # (B, Ep) f32
    ta = jnp.take(TA_p, stories_idx, axis=0)              # (B, T, Ep)
    tc = jnp.take(TC_p, stories_idx, axis=0)              # (B, T, Ep)
    bias = jnp.where(stories_idx == pad_idx, -1e30, 0.0).astype(jnp.float32)

    # ---- batch tiling (per-generation) ---------------------------------------
    bB_cap, vmem_limit = _GEN_CONFIG
    bB = min(bB_cap, _round_up(B, 8))
    if _GEN == "v7x" and B > 8:
        # 2 TensorCores on v7x: make sure the 'parallel' batch grid has >= 2
        # steps so both cores get work.
        bB = min(bB, _round_up((B + 1) // 2, 8))
    Bp = _round_up(B, bB)

    # Batch-pad rows are all-zero with bias 0 -> finite uniform softmax; they
    # are sliced off at the end (keep that invariant).
    se = jnp.pad(se, ((0, 0), (0, Bp - B), (0, 0), (0, 0))).astype(jnp.bfloat16)
    u0 = jnp.pad(u0, ((0, Bp - B), (0, 0))).astype(jnp.float32)
    ta = jnp.pad(ta, ((0, Bp - B), (0, 0), (0, 0))).astype(jnp.bfloat16)
    tc = jnp.pad(tc, ((0, Bp - B), (0, 0), (0, 0))).astype(jnp.bfloat16)
    bias = jnp.pad(bias, ((0, Bp - B), (0, 0)))

    grid = (Bp // bB,)
    common_in_specs = [
        pl.BlockSpec((NH1, bB, T, Ep), lambda i: (0, i, 0, 0)),
        pl.BlockSpec((bB, Ep), lambda i: (i, 0)),
        pl.BlockSpec((bB, T, Ep), lambda i: (i, 0, 0)),
        pl.BlockSpec((bB, T, Ep), lambda i: (i, 0, 0)),
        pl.BlockSpec((bB, T), lambda i: (i, 0)),
    ]
    hop_flops = 4 * n_hops * Bp * T * Ep
    common_bytes = (se.size + ta.size + tc.size) * 2 + (u0.size + bias.size) * 4
    compiler_params = pltpu.CompilerParams(
        dimension_semantics=("parallel",),
        vmem_limit_bytes=vmem_limit)

    if Vp <= _SPLIT_FINAL_VOCAB:
        # ---- fused path: final linear inside the kernel ----------------------
        # Pre-transpose to (Ep, Vp): MXU-native (K, N) layout, vocab on lanes.
        wl = jnp.pad(W_p[n_hops], ((0, Vp - V), (0, 0))).T.astype(jnp.bfloat16)
        cost = pl.CostEstimate(
            flops=int(hop_flops + 2 * Bp * Ep * Vp),
            transcendentals=int(n_hops * Bp * T),
            bytes_accessed=int(common_bytes + wl.size * 2 + Bp * Vp * 4))
        out = pl.pallas_call(
            memn2n_fused_kernel,
            out_shape=jax.ShapeDtypeStruct((Bp, Vp), jnp.float32),
            grid_spec=pltpu.PrefetchScalarGridSpec(
                num_scalar_prefetch=0,
                grid=grid,
                in_specs=common_in_specs
                + [pl.BlockSpec((Ep, Vp), lambda i: (0, 0))],
                out_specs=pl.BlockSpec((bB, Vp), lambda i: (i, 0)),
            ),
            compiler_params=compiler_params,
            cost_estimate=cost,
        )(se, u0, ta, tc, bias, wl)
        return out[:B, :V]

    # ---- large-vocab path: hop kernel returns u; projection is a separately
    # tiled XLA matmul (vocab axis gets proper M/N/K tiling & pipelining). ----
    cost = pl.CostEstimate(
        flops=int(hop_flops),
        transcendentals=int(n_hops * Bp * T),
        bytes_accessed=int(common_bytes + Bp * Ep * 4))
    u_out = pl.pallas_call(
        memn2n_hops_kernel,
        out_shape=jax.ShapeDtypeStruct((Bp, Ep), jnp.float32),
        grid_spec=pltpu.PrefetchScalarGridSpec(
            num_scalar_prefetch=0,
            grid=grid,
            in_specs=common_in_specs,
            out_specs=pl.BlockSpec((bB, Ep), lambda i: (i, 0)),
        ),
        compiler_params=compiler_params,
        cost_estimate=cost,
    )(se, u0, ta, tc, bias)
    return jnp.einsum('be,ve->bv', u_out[:B, :E], W[n_hops])


# --------------------------------------------------------------------------- #
# Pure-JAX reference
# --------------------------------------------------------------------------- #
def memn2n_ref(stories, queries, stories_idx, W, TA, TC, n_hops, pad_idx=0):
    """Pure-JAX f32 reference mirroring the PyTorch forward (bow, adjacent, te)."""
    u = W[0][queries].sum(1)                                   # (B, E)
    for k in range(n_hops):
        m = W[k][stories].sum(2) + TA[stories_idx]             # (B, T, E)
        c = W[k + 1][stories].sum(2) + TC[stories_idx]
        score = jnp.einsum('bte,be->bt', m, u)
        score = jnp.where(stories_idx == pad_idx, -jnp.inf, score)
        p = jax.nn.softmax(score, axis=1)
        o = jnp.einsum('bt,bte->be', p, c)
        u = u + o
    return jnp.einsum('be,ve->bv', u, W[n_hops])


if __name__ == "__main__":
    # Small, module-consistent shapes.
    B, T, n_words, Tq = 2, 8, 6, 5
    vocab_size, embed_size, n_hops = 64, 32, 3
    maxlen_story = T
    pad_idx = 0

    key = jax.random.PRNGKey(0)
    k_w, k_ta, k_tc, k_s, k_q = jax.random.split(key, 5)

    # Deterministic parameter init: normal(0, 0.1), row pad_idx zeroed
    # (mirrors weight_init + padding_idx). Adjacent sharing => n_hops+1 tables.
    W = 0.1 * jax.random.normal(k_w, (n_hops + 1, vocab_size, embed_size),
                                dtype=jnp.float32)
    W = W.at[:, pad_idx, :].set(0.0)
    TA = 0.1 * jax.random.normal(k_ta, (maxlen_story + 1, embed_size),
                                 dtype=jnp.float32)
    TA = TA.at[pad_idx].set(0.0)
    TC = 0.1 * jax.random.normal(k_tc, (maxlen_story + 1, embed_size),
                                 dtype=jnp.float32)
    TC = TC.at[pad_idx].set(0.0)

    # Deterministic inputs: tokens in [1, V); pad the last two sentences of
    # the second story (tokens and temporal indices set to 0).
    stories = jax.random.randint(k_s, (B, T, n_words), 1, vocab_size,
                                 dtype=jnp.int32)
    queries = jax.random.randint(k_q, (B, Tq), 1, vocab_size, dtype=jnp.int32)
    stories_idx = jnp.broadcast_to(jnp.arange(1, T + 1, dtype=jnp.int32),
                                   (B, T))
    stories = stories.at[1, T - 2:, :].set(0)
    stories_idx = stories_idx.at[1, T - 2:].set(0)

    out = memn2n_forward(stories, queries, stories_idx, W, TA, TC,
                         pad_idx=pad_idx)
    out = jax.block_until_ready(out)

    ref = memn2n_ref(stories, queries, stories_idx, W, TA, TC, n_hops,
                     pad_idx=pad_idx)
    # bf16 story embeddings + bf16 final-linear MXU operands (f32 accumulation)
    # => looser tolerance than pure f32.
    np.testing.assert_allclose(np.asarray(out), np.asarray(ref),
                               rtol=2e-2, atol=2e-2)

    print("KERNEL_OK")
</pallas_src>

<mosaic_0001>
module attributes {stable_mosaic.version = 11 : i64} {
  func.func @memn2n_fused_kernel(%arg0: i32, %arg1: memref<4x8x8x128xbf16, #tpu.memory_space<vmem>>, %arg2: memref<8x128xf32, #tpu.memory_space<vmem>>, %arg3: memref<8x8x128xbf16, #tpu.memory_space<vmem>>, %arg4: memref<8x8x128xbf16, #tpu.memory_space<vmem>>, %arg5: memref<8x8xf32, #tpu.memory_space<vmem>>, %arg6: memref<128x128xbf16, #tpu.memory_space<vmem>>, %arg7: memref<8x128xf32, #tpu.memory_space<vmem>>) attributes {dimension_semantics = [#tpu.dimension_semantics<parallel>], iteration_bounds = array<i64: 1>, scalar_prefetch = 0 : i64, scratch_operands = 0 : i64, tpu.core_type = #tpu.core_type<tc>, window_params = [{transform_indices = @transform_0, window_bounds = array<i64: 4, 8, 8, 128>}, {transform_indices = @transform_1, window_bounds = array<i64: 8, 128>}, {transform_indices = @transform_2, window_bounds = array<i64: 8, 8, 128>}, {transform_indices = @transform_3, window_bounds = array<i64: 8, 8, 128>}, {transform_indices = @transform_4, window_bounds = array<i64: 8, 8>}, {pipeline_mode = #tpu.pipeline_mode<synchronous>, transform_indices = @transform_5, window_bounds = array<i64: 128, 128>}, {transform_indices = @transform_6, window_bounds = array<i64: 8, 128>}]} {
    %c0 = arith.constant 0 : index
    %c0_0 = arith.constant 0 : index
    %0 = vector.load %arg2[%c0, %c0_0] : memref<8x128xf32, #tpu.memory_space<vmem>>, vector<8x128xf32>
    %c0_1 = arith.constant 0 : index
    %c0_2 = arith.constant 0 : index
    %c0_3 = arith.constant 0 : index
    %1 = vector.load %arg3[%c0_1, %c0_2, %c0_3] : memref<8x8x128xbf16, #tpu.memory_space<vmem>>, vector<8x8x128xbf16>
    %2 = arith.extf %1 : vector<8x8x128xbf16> to vector<8x8x128xf32>
    %c0_4 = arith.constant 0 : index
    %c0_5 = arith.constant 0 : index
    %c0_6 = arith.constant 0 : index
    %3 = vector.load %arg4[%c0_4, %c0_5, %c0_6] : memref<8x8x128xbf16, #tpu.memory_space<vmem>>, vector<8x8x128xbf16>
    %4 = arith.extf %3 : vector<8x8x128xbf16> to vector<8x8x128xf32>
    %c0_7 = arith.constant 0 : index
    %c0_8 = arith.constant 0 : index
    %5 = vector.load %arg5[%c0_7, %c0_8] : memref<8x8xf32, #tpu.memory_space<vmem>>, vector<8x8xf32>
    %c0_9 = arith.constant 0 : index
    %c0_10 = arith.constant 0 : index
    %c0_11 = arith.constant 0 : index
    %c0_12 = arith.constant 0 : index
    %6 = vector.load %arg1[%c0_9, %c0_10, %c0_11, %c0_12] : memref<4x8x8x128xbf16, #tpu.memory_space<vmem>>, vector<1x8x8x128xbf16>
    %7 = vector.shape_cast %6 : vector<1x8x8x128xbf16> to vector<8x8x128xbf16>
    %8 = arith.extf %7 : vector<8x8x128xbf16> to vector<8x8x128xf32>
    %9 = arith.addf %8, %2 : vector<8x8x128xf32>
    %c1 = arith.constant 1 : index
    %c0_13 = arith.constant 0 : index
    %c0_14 = arith.constant 0 : index
    %c0_15 = arith.constant 0 : index
    %10 = vector.load %arg1[%c1, %c0_13, %c0_14, %c0_15] : memref<4x8x8x128xbf16, #tpu.memory_space<vmem>>, vector<1x8x8x128xbf16>
    %11 = vector.shape_cast %10 : vector<1x8x8x128xbf16> to vector<8x8x128xbf16>
    %12 = arith.extf %11 : vector<8x8x128xbf16> to vector<8x8x128xf32>
    %13 = arith.addf %12, %4 : vector<8x8x128xf32>
    %14 = vector.shape_cast %0 : vector<8x128xf32> to vector<8x1x128xf32>
    %15 = vector.broadcast %14 : vector<8x1x128xf32> to vector<8x8x128xf32>
    %16 = arith.mulf %9, %15 : vector<8x8x128xf32>
    %cst = arith.constant dense<0.000000e+00> : vector<8x8xf32>
    %17 = vector.multi_reduction <add>, %16, %cst [2] : vector<8x8x128xf32> to vector<8x8xf32>
    %18 = arith.addf %17, %5 : vector<8x8xf32>
    %cst_16 = arith.constant dense<0xFF800000> : vector<8xf32>
    %19 = vector.multi_reduction <maximumf>, %18, %cst_16 [1] : vector<8x8xf32> to vector<8xf32>
    %20 = vector.shape_cast %19 : vector<8xf32> to vector<8x1xf32>
    %21 = vector.broadcast %20 : vector<8x1xf32> to vector<8x8xf32>
    %22 = arith.subf %18, %21 : vector<8x8xf32>
    %23 = math.exp %22 : vector<8x8xf32>
    %cst_17 = arith.constant dense<0.000000e+00> : vector<8xf32>
    %24 = vector.multi_reduction <add>, %23, %cst_17 [1] : vector<8x8xf32> to vector<8xf32>
    %25 = vector.shape_cast %24 : vector<8xf32> to vector<8x1xf32>
    %26 = tpu.reciprocal %25 {approx = true} : vector<8x1xf32> -> vector<8x1xf32>
    %27 = vector.broadcast %26 : vector<8x1xf32> to vector<8x8xf32>
    %28 = arith.mulf %23, %27 : vector<8x8xf32>
    %29 = vector.shape_cast %28 : vector<8x8xf32> to vector<8x8x1xf32>
    %30 = vector.broadcast %29 : vector<8x8x1xf32> to vector<8x8x128xf32>
    %31 = arith.mulf %30, %13 : vector<8x8x128xf32>
    %cst_18 = arith.constant dense<0.000000e+00> : vector<8x128xf32>
    %32 = vector.multi_reduction <add>, %31, %cst_18 [1] : vector<8x8x128xf32> to vector<8x128xf32>
    %33 = arith.addf %0, %32 : vector<8x128xf32>
    %c1_19 = arith.constant 1 : index
    %c0_20 = arith.constant 0 : index
    %c0_21 = arith.constant 0 : index
    %c0_22 = arith.constant 0 : index
    %34 = vector.load %arg1[%c1_19, %c0_20, %c0_21, %c0_22] : memref<4x8x8x128xbf16, #tpu.memory_space<vmem>>, vector<1x8x8x128xbf16>
    %35 = vector.shape_cast %34 : vector<1x8x8x128xbf16> to vector<8x8x128xbf16>
    %36 = arith.extf %35 : vector<8x8x128xbf16> to vector<8x8x128xf32>
    %37 = arith.addf %36, %2 : vector<8x8x128xf32>
    %c2 = arith.constant 2 : index
    %c0_23 = arith.constant 0 : index
    %c0_24 = arith.constant 0 : index
    %c0_25 = arith.constant 0 : index
    %38 = vector.load %arg1[%c2, %c0_23, %c0_24, %c0_25] : memref<4x8x8x128xbf16, #tpu.memory_space<vmem>>, vector<1x8x8x128xbf16>
    %39 = vector.shape_cast %38 : vector<1x8x8x128xbf16> to vector<8x8x128xbf16>
    %40 = arith.extf %39 : vector<8x8x128xbf16> to vector<8x8x128xf32>
    %41 = arith.addf %40, %4 : vector<8x8x128xf32>
    %42 = vector.shape_cast %33 : vector<8x128xf32> to vector<8x1x128xf32>
    %43 = vector.broadcast %42 : vector<8x1x128xf32> to vector<8x8x128xf32>
    %44 = arith.mulf %37, %43 : vector<8x8x128xf32>
    %cst_26 = arith.constant dense<0.000000e+00> : vector<8x8xf32>
    %45 = vector.multi_reduction <add>, %44, %cst_26 [2] : vector<8x8x128xf32> to vector<8x8xf32>
    %46 = arith.addf %45, %5 : vector<8x8xf32>
    %cst_27 = arith.constant dense<0xFF800000> : vector<8xf32>
    %47 = vector.multi_reduction <maximumf>, %46, %cst_27 [1] : vector<8x8xf32> to vector<8xf32>
    %48 = vector.shape_cast %47 : vector<8xf32> to vector<8x1xf32>
    %49 = vector.broadcast %48 : vector<8x1xf32> to vector<8x8xf32>
    %50 = arith.subf %46, %49 : vector<8x8xf32>
    %51 = math.exp %50 : vector<8x8xf32>
    %cst_28 = arith.constant dense<0.000000e+00> : vector<8xf32>
    %52 = vector.multi_reduction <add>, %51, %cst_28 [1] : vector<8x8xf32> to vector<8xf32>
    %53 = vector.shape_cast %52 : vector<8xf32> to vector<8x1xf32>
    %54 = tpu.reciprocal %53 {approx = true} : vector<8x1xf32> -> vector<8x1xf32>
    %55 = vector.broadcast %54 : vector<8x1xf32> to vector<8x8xf32>
    %56 = arith.mulf %51, %55 : vector<8x8xf32>
    %57 = vector.shape_cast %56 : vector<8x8xf32> to vector<8x8x1xf32>
    %58 = vector.broadcast %57 : vector<8x8x1xf32> to vector<8x8x128xf32>
    %59 = arith.mulf %58, %41 : vector<8x8x128xf32>
    %cst_29 = arith.constant dense<0.000000e+00> : vector<8x128xf32>
    %60 = vector.multi_reduction <add>, %59, %cst_29 [1] : vector<8x8x128xf32> to vector<8x128xf32>
    %61 = arith.addf %33, %60 : vector<8x128xf32>
    %c2_30 = arith.constant 2 : index
    %c0_31 = arith.constant 0 : index
    %c0_32 = arith.constant 0 : index
    %c0_33 = arith.constant 0 : index
    %62 = vector.load %arg1[%c2_30, %c0_31, %c0_32, %c0_33] : memref<4x8x8x128xbf16, #tpu.memory_space<vmem>>, vector<1x8x8x128xbf16>
    %63 = vector.shape_cast %62 : vector<1x8x8x128xbf16> to vector<8x8x128xbf16>
    %64 = arith.extf %63 : vector<8x8x128xbf16> to vector<8x8x128xf32>
    %65 = arith.addf %64, %2 : vector<8x8x128xf32>
    %c3 = arith.constant 3 : index
    %c0_34 = arith.constant 0 : index
    %c0_35 = arith.constant 0 : index
    %c0_36 = arith.constant 0 : index
    %66 = vector.load %arg1[%c3, %c0_34, %c0_35, %c0_36] : memref<4x8x8x128xbf16, #tpu.memory_space<vmem>>, vector<1x8x8x128xbf16>
    %67 = vector.shape_cast %66 : vector<1x8x8x128xbf16> to vector<8x8x128xbf16>
    %68 = arith.extf %67 : vector<8x8x128xbf16> to vector<8x8x128xf32>
    %69 = arith.addf %68, %4 : vector<8x8x128xf32>
    %70 = vector.shape_cast %61 : vector<8x128xf32> to vector<8x1x128xf32>
    %71 = vector.broadcast %70 : vector<8x1x128xf32> to vector<8x8x128xf32>
    %72 = arith.mulf %65, %71 : vector<8x8x128xf32>
    %cst_37 = arith.constant dense<0.000000e+00> : vector<8x8xf32>
    %73 = vector.multi_reduction <add>, %72, %cst_37 [2] : vector<8x8x128xf32> to vector<8x8xf32>
    %74 = arith.addf %73, %5 : vector<8x8xf32>
    %cst_38 = arith.constant dense<0xFF800000> : vector<8xf32>
    %75 = vector.multi_reduction <maximumf>, %74, %cst_38 [1] : vector<8x8xf32> to vector<8xf32>
    %76 = vector.shape_cast %75 : vector<8xf32> to vector<8x1xf32>
    %77 = vector.broadcast %76 : vector<8x1xf32> to vector<8x8xf32>
    %78 = arith.subf %74, %77 : vector<8x8xf32>
    %79 = math.exp %78 : vector<8x8xf32>
    %cst_39 = arith.constant dense<0.000000e+00> : vector<8xf32>
    %80 = vector.multi_reduction <add>, %79, %cst_39 [1] : vector<8x8xf32> to vector<8xf32>
    %81 = vector.shape_cast %80 : vector<8xf32> to vector<8x1xf32>
    %82 = tpu.reciprocal %81 {approx = true} : vector<8x1xf32> -> vector<8x1xf32>
    %83 = vector.broadcast %82 : vector<8x1xf32> to vector<8x8xf32>
    %84 = arith.mulf %79, %83 : vector<8x8xf32>
    %85 = vector.shape_cast %84 : vector<8x8xf32> to vector<8x8x1xf32>
    %86 = vector.broadcast %85 : vector<8x8x1xf32> to vector<8x8x128xf32>
    %87 = arith.mulf %86, %69 : vector<8x8x128xf32>
    %cst_40 = arith.constant dense<0.000000e+00> : vector<8x128xf32>
    %88 = vector.multi_reduction <add>, %87, %cst_40 [1] : vector<8x8x128xf32> to vector<8x128xf32>
    %89 = arith.addf %61, %88 : vector<8x128xf32>
    %90 = arith.truncf %89 : vector<8x128xf32> to vector<8x128xbf16>
    %c0_41 = arith.constant 0 : index
    %c0_42 = arith.constant 0 : index
    %91 = vector.load %arg6[%c0_41, %c0_42] : memref<128x128xbf16, #tpu.memory_space<vmem>>, vector<128x128xbf16>
    %cst_43 = arith.constant dense<0.000000e+00> : vector<8x128xf32>
    %92 = tpu.matmul %90, %91, %cst_43 {dimension_numbers = #tpu.dot_dimension_numbers<[1], [0], [0], [1], [0, 0, 1, 1], [], []>} : vector<8x128xbf16>, vector<128x128xbf16>, vector<8x128xf32> -> vector<8x128xf32>
    %c0_44 = arith.constant 0 : index
    %c0_45 = arith.constant 0 : index
    %93 = vector.load %arg7[%c0_44, %c0_45] : memref<8x128xf32, #tpu.memory_space<vmem>>, vector<8x128xf32>
    tpu.vector_store %arg7[%c0_44, %c0_45], %92 {strides = array<i32>} : memref<8x128xf32, #tpu.memory_space<vmem>>, vector<8x128xf32>,
    return
  }
  func.func @transform_0(%arg0: i32) -> (i32, i32, i32, i32) {
    %c0_i32 = arith.constant 0 : i32
    %c0_i32_0 = arith.constant 0 : i32
    %c0_i32_1 = arith.constant 0 : i32
    %c0_i32_2 = arith.constant 0 : i32
    return %c0_i32, %arg0, %c0_i32_0, %c0_i32_1 : i32, i32, i32, i32
  }
  func.func @transform_1(%arg0: i32) -> (i32, i32) {
    %c0_i32 = arith.constant 0 : i32
    %c0_i32_0 = arith.constant 0 : i32
    return %arg0, %c0_i32 : i32, i32
  }
  func.func @transform_2(%arg0: i32) -> (i32, i32, i32) {
    %c0_i32 = arith.constant 0 : i32
    %c0_i32_0 = arith.constant 0 : i32
    %c0_i32_1 = arith.constant 0 : i32
    return %arg0, %c0_i32, %c0_i32_0 : i32, i32, i32
  }
  func.func @transform_3(%arg0: i32) -> (i32, i32, i32) {
    %c0_i32 = arith.constant 0 : i32
    %c0_i32_0 = arith.constant 0 : i32
    %c0_i32_1 = arith.constant 0 : i32
    return %arg0, %c0_i32, %c0_i32_0 : i32, i32, i32
  }
  func.func @transform_4(%arg0: i32) -> (i32, i32) {
    %c0_i32 = arith.constant 0 : i32
    %c0_i32_0 = arith.constant 0 : i32
    return %arg0, %c0_i32 : i32, i32
  }
  func.func @transform_5(%arg0: i32) -> (i32, i32) {
    %c0_i32 = arith.constant 0 : i32
    %c0_i32_0 = arith.constant 0 : i32
    %c0_i32_1 = arith.constant 0 : i32
    return %c0_i32, %c0_i32_0 : i32, i32
  }
  func.func @transform_6(%arg0: i32) -> (i32, i32) {
    %c0_i32 = arith.constant 0 : i32
    %c0_i32_0 = arith.constant 0 : i32
    return %arg0, %c0_i32 : i32, i32
  }
}

</mosaic_0001>

<bundles_post_ra>
// kernel: memn2n_forward.1
= control target key start
LH: loop header
LB: loop body
LE: loop exit
PB: predicated region body
PF: predicated region fallthrough
CT: control target
= control target key end

     0   :  { %v112_v0 = vlaneseq  ;;  %v2105_v3 = vmov 1966171168   ;;  %vm360_vm0 = vcmask 1041409   ;;  %vm362_vm1 = vcmask 1042434   ;;  %s2754_s0 = inlined_call_operand.vmem [shape: bf16[4,8,8,128], index: 0, kind: input, shape index: {}]   ;;  %s2755_s2 = inlined_call_operand.vmem [shape: bf16[8,8,128], index: 2, kind: input, shape index: {}]   ;;  %s2756_s1 = inlined_call_operand.vmem [shape: f32[8,128], index: 1, kind: input, shape index: {}]   ;;  %s2757_s4 = inlined_call_operand.vmem [shape: f32[8,8], index: 4, kind: input, shape index: {}]   ;;  %s2758_s3 = inlined_call_operand.vmem [shape: bf16[8,8,128], index: 3, kind: input, shape index: {}]   ;;  %s2759_s5 = inlined_call_operand.vmem [shape: bf16[128,128], index: 5, kind: input, shape index: {}]   ;;  %s2760_s6 = inlined_call_operand.vmem [shape: f32[8,128], index: 6, kind: output, shape index: {}]  }
   0x1   :  { %v1891_v1 = vld [vmem:[%s2755_s2] sm:$0xff]   ;;  %v110_v4 = vunpack.c.l.s4 %v2105_v3  ;;  %v1986_v7 = vld [vmem:[%s2755_s2 + $0x8] sm:$0xff]   ;;  %v1987_v10 = vld [vmem:[%s2755_s2 + $0x10] sm:$0xff]   ;;  %vm364_vm2 = vcmask 1043459   ;;  %vm366_vm3 = vcmask 1044484   ;;  %vm368_vm4 = vcmask 1045509  }
   0x2   :  { %v1923_v2 = vld [vmem:[%s2754_s0] sm:$0xff]   ;;  %v2150_v5 = vshrl.u32 %v112_v0, 7  ;;  %v327_v6 = vand.u32 127, %v112_v0  ;;  %v1992_v9 = vld [vmem:[%s2754_s0 + $0x8] sm:$0xff]   ;;  %v1993_v11 = vld [vmem:[%s2754_s0 + $0x10] sm:$0xff]   ;;  %v2169_v13 = vunpack.c.l.bf16 %v1891_v1  ;;  %v2179_v18 = vunpack.c.l.bf16 %v1986_v7 }
   0x3   :  { %v111_v8 = vunpack.c.0.s8 %v110_v4  ;;  %v2167_v12 = vld [vmem:[%s2756_s1] sm:$0xff]  ;;  %v1924_v14 = vunpack.c.l.bf16 %v1923_v2  ;;  %v1928_v19 = vunpack.c.l.bf16 %v1992_v9  ;;  %v2181_v20 = vunpack.c.l.bf16 %v1987_v10  ;;  %v1988_v40 = vld [vmem:[%s2755_s2 + $0x18] sm:$0xff]  }
   0x4   :  { %v2172_v15 = vsub.s32 %v327_v6, %v2150_v5  ;;  %v108_v17 = vcombine.high %v2167_v12, %v2167_v12  ;;  %v1932_v21 = vunpack.c.l.bf16 %v1993_v11  ;;  %v2186_v23 = vsub.s32 0, %v2150_v5  ;;  %v1994_v41 = vld [vmem:[%s2754_s0 + $0x18] sm:$0xff]  }
   0x5   :  { %v2175_v16 = vsub.s32 %v111_v8, %v2150_v5  ;;  %v74_v25 = vadd.f32 %v1924_v14, %v2169_v13  ;;  %v2190_v26 = vunpack.c.h.bf16 %v1987_v10  ;;  %v1933_v27 = vunpack.c.h.bf16 %v1993_v11 }
   0x6   :  { %v76_v32 = vadd.f32 %v1928_v19, %v2179_v18  ;;  %v78_v33 = vadd.f32 %v1932_v21, %v2181_v20  ;;  %v2196_v34 = vunpack.c.h.bf16 %v1891_v1  ;;  %v1925_v35 = vunpack.c.h.bf16 %v1923_v2 }
   0x7   :  { %v115_v22 = vrot.slane %v2167_v12, %v2175_v16  ;;  %v122_v24 = vrot.slane %v108_v17, %v2175_v16  ;;  %v2208_v43 = vunpack.c.h.bf16 %v1986_v7  ;;  %v1929_v44 = vunpack.c.h.bf16 %v1992_v9  ;;  %v57_v9 = vld [vmem:[%s2757_s4] sm:$0xff] }
   0x8   :  { %v79_v47 = vadd.f32 %v1933_v27, %v2190_v26  ;;  %v75_v49 = vadd.f32 %v1925_v35, %v2196_v34  ;;  %v2214_v51 = vunpack.c.l.bf16 %v1988_v40  ;;  %v1936_v52 = vunpack.c.l.bf16 %v1994_v41 }
   0x9   :  { %v131_v28 = vrot.slane %v115_v22, %v2175_v16  ;;  %v138_v29 = vrot.slane %v122_v24, %v2175_v16  ;;  %v124_v30 = vcombine.high %v122_v24, %v122_v24  ;;  %v123_v31 = vcombine.high %v115_v22, %v115_v22 }
   0xa   :  { %v77_v57 = vadd.f32 %v1929_v44, %v2208_v43  ;;  %v2218_v58 = vunpack.c.h.bf16 %v1988_v40  ;;  %v1937_v61 = vunpack.c.h.bf16 %v1994_v41  ;;  %v80_v0 = vadd.f32 %v1936_v52, %v2214_v51 }
   0xb   :  { %v160_v36 = vrot.slane %v131_v28, %v2186_v23  ;;  %v153_v37 = vcombine.high %v131_v28, %v131_v28  ;;  %v176_v38 = vrot.slane %v138_v29, %v2186_v23  ;;  %v152_v39 = vrot.slane %v124_v30, %v2175_v16 }
   0xc   :  { %v145_v42 = vrot.slane %v123_v31, %v2175_v16  ;;  %v154_v56 = vcombine.high %v138_v29, %v138_v29  ;;  %v81_v3 = vadd.f32 %v1937_v61, %v2218_v58  ;;  %v2226_v8 = vsub.s32 1, %v2150_v5 }
   0xd   :  { %v197_v45 = vmul.f32 %v160_v36, %v74_v25  ;;  %v168_v46 = vrot.slane %v153_v37, %v2186_v23  ;;  %v180_v48 = vrot.slane %v152_v39, %v2186_v23  ;;  %v201_v54 = vmul.f32 %v176_v38, %v78_v33 }
   0xe   :  { %v155_v50 = vcombine.high %v145_v42, %v145_v42  ;;  %v164_v55 = vrot.slane %v145_v42, %v2186_v23  ;;  %v156_v62 = vcombine.high %v152_v39, %v152_v39  ;;  %v184_v1 = vrot.slane %v154_v56, %v2186_v23 }
   0xf   :  { %205 = vadd.xlane.f32.xlu0 %v197_v45  ;;  %v199_v53 = vmul.f32 %v168_v46, %v76_v32  ;;  %v202_v59 = vmul.f32 %v180_v48, %v79_v47  ;;  %v232_v10 = vrot.slane %v57_v9, %v2226_v8  ;;  %v2233_v11 = vsub.s32 2, %v2150_v5 }
  0x10   :  { %v172_v60 = vrot.slane %v155_v50, %v2186_v23  ;;  %v198_v63 = vmul.f32 %v164_v55, %v75_v49  ;;  %v188_v4 = vrot.slane %v156_v62, %v2186_v23  ;;  %v203_v6 = vmul.f32 %v184_v1, %v80_v0 }
  0x11   :  { %209 = vadd.xlane.f32.xlu1 %v199_v53  ;;  %v225_v14 = vrot.slane %v57_v9, %v2186_v23  ;;  %v2237_v17 = vsub.s32 4, %v2150_v5  ;;  %v2106_v19 = vmov 0   ;;  %v239_v21 = vrot.slane %v57_v9, %v2233_v11 }
  0x12   :  { %v200_v2 = vmul.f32 %v172_v60, %v77_v57  ;;  %v204_v7 = vmul.f32 %v188_v4, %v81_v3  ;;  %2040 = vset.pattern.permute.xlu0 %v2106_v19  ;;  %2041 = vset.pattern.permute.xlu1 %v2106_v19  ;;  %v2241_v22 = vsub.s32 3, %v2150_v5  ;;  %v2245_v25 = vsub.s32 6, %v2150_v5 }
  0x13   :  { %213 = vadd.xlane.f32.xlu0 %v201_v54  ;;  %v253_v24 = vrot.slane %v57_v9, %v2237_v17  ;;  %v2249_v28 = vsub.s32 5, %v2150_v5  ;;  %v2254_v31 = vsub.s32 7, %v2150_v5  ;;  %vm370_vm5 = vcmask 1046534  }
  0x14   :  { %v246_v27 = vrot.slane %v57_v9, %v2241_v22  ;;  %v267_v29 = vrot.slane %v57_v9, %v2245_v25  ;;  %vm372_vm6 = vcmask 1047559   ;;  %vm375_vm7 = vcmask 64512  }
  0x15   :  { %215 = vadd.xlane.f32.xlu1 %v202_v59  ;;  %v260_v30 = vrot.slane %v57_v9, %v2249_v28  ;;  %2796 = vst [vmem:[#allocation2_spill] sm:$0xff] %v2254_v31  ;;  %v274_v32 = vrot.slane %v57_v9, %v2254_v31  ;;  %vm2108_vm8 = vmmov 0  }
  0x17   :  { %207 = vadd.xlane.f32.xlu0 %v198_v63 }
  0x19   :  { %211 = vadd.xlane.f32.xlu1 %v200_v2 }
  0x1b   :  { %217 = vadd.xlane.f32.xlu0 %v203_v6 }
  0x1d   :  { %219 = vadd.xlane.f32.xlu1 %v204_v7 }
  0x2e   :  { %234 = vbcast.lane.b32.xlu1 %v232_v10, 256 }
  0x31   :  { %227 = vbcast.lane.b32.xlu0 %v225_v14, 256 }
  0x32   :  { %241 = vbcast.lane.b32.xlu1 %v239_v21, 256 }
  0x35   :  { %255 = vbcast.lane.b32.xlu0 %v253_v24, 256 }
  0x36   :  { %248 = vbcast.lane.b32.xlu1 %v246_v27, 256 }
  0x39   :  { %269 = vbcast.lane.b32.xlu0 %v267_v29, 256 }
  0x3a   :  { %262 = vbcast.lane.b32.xlu1 %v260_v30, 256 }
  0x3e   :  { %276 = vbcast.lane.b32.xlu1 %v274_v32, 256 }
  0x9c   :  { %v206_v33 = vpop.xlane.xlu0 %205 }
  0x9e   :  { %v210_v35 = vpop.xlane.xlu1 %209 }
  0xa0   :  { %v214_v36 = vpop.xlane.xlu0 %213 }
  0xa2   :  { %v216_v37 = vpop.xlane.xlu1 %215 }
  0xa4   :  { %v208_v38 = vpop.xlane.xlu0 %207 }
  0xa6   :  { %v212_v39 = vpop.xlane.xlu1 %211 }
  0xa8   :  { %v218_v40 = vpop.xlane.xlu0 %217 }
  0xaa   :  { %v220_v41 = vpop.xlane.xlu1 %219 }
  0xac   :  { %v2257_v42 = vpop.permute.xlu0 %227 }
  0xad   :  { %v286_v44 = vadd.f32 %v2257_v42, %v206_v33 }
  0xae   :  { %v2260_v45 = vpop.permute.xlu1 %234 }
  0xaf   :  { %303 = vperm.xlu0 %2040, %v286_v44   ;;  %v287_v48 = vadd.f32 %v2260_v45, %v208_v38 }
  0xb0   :  { %v2262_v5 = vpop.permute.xlu0 %255 }
  0xb1   :  { %v2265_v46 = vadd.f32 %v2262_v5, %v214_v36 }
  0xb2   :  { %v2267_v47 = vpop.permute.xlu1 %241 }
  0xb3   :  { %315 = vperm.xlu1 %2041, %v2265_v46   ;;  %v288_v50 = vadd.f32 %v2267_v47, %v210_v35 }
  0xb4   :  { %v2274_v52 = vpop.permute.xlu0 %269 }
  0xb5   :  { %v2282_v55 = vadd.f32 %v2274_v52, %v218_v40 }
  0xb6   :  { %v2271_v49 = vpop.permute.xlu1 %248 }
  0xb7   :  { %306 = vperm.xlu1 %2041, %v287_v48   ;;  %v289_v56 = vadd.f32 %v2271_v49, %v212_v39 }
  0xba   :  { %v2276_v53 = vpop.permute.xlu1 %262 }
  0xbb   :  { %v2279_v54 = vadd.f32 %v2276_v53, %v216_v37  ;;  %309 = vperm.xlu1 %2041, %v288_v50  }
  0xbd   :  { %318 = vperm.xlu0 %2040, %v2279_v54  }
  0xbe   :  { %v2287_v57 = vpop.permute.xlu1 %276 }
  0xbf   :  { %321 = vperm.xlu1 %2041, %v2282_v55   ;;  %v2290_v59 = vadd.f32 %v2287_v57, %v220_v41 }
  0xc1   :  { %312 = vperm.xlu0 %2040, %v289_v56  }
  0xc5   :  { %324 = vperm.xlu0 %2040, %v2290_v59  }
 0x12e   :  { %v304_v62 = vpop.permute.xlu0 %303 }
 0x12f   :  { %v331_v3 = vrot.slane %v304_v62, %v2172_v15 }
 0x132   :  { %v316_v60 = vpop.permute.xlu1 %315 }
 0x133   :  { %v347_v10 = vrot.slane %v316_v60, %v2172_v15 }
 0x136   :  { %v307_v61 = vpop.permute.xlu1 %306 }
 0x137   :  { %v335_v1 = vrot.slane %v307_v61, %v2172_v15 }
 0x139   :  { %v361_v6 = vsel %vm360_vm0, %v335_v1, %v331_v3 }
 0x13a   :  { %v310_v63 = vpop.permute.xlu1 %309 }
 0x13b   :  { %v339_v2 = vrot.slane %v310_v63, %v2172_v15 }
 0x13c   :  { %v319_v0 = vpop.permute.xlu0 %318 }
 0x13d   :  { %v363_v14 = vsel %vm362_vm1, %v339_v2, %v361_v6  ;;  %v351_v19 = vrot.slane %v319_v0, %v2172_v15 }
 0x13e   :  { %v322_v7 = vpop.permute.xlu1 %321 }
 0x13f   :  { %v355_v24 = vrot.slane %v322_v7, %v2172_v15 }
 0x140   :  { %v313_v4 = vpop.permute.xlu0 %312 }
 0x141   :  { %v343_v9 = vrot.slane %v313_v4, %v2172_v15 }
 0x143   :  { %v365_v21 = vsel %vm364_vm2, %v343_v9, %v363_v14 }
 0x144   :  { %v367_v27 = vsel %vm366_vm3, %v347_v10, %v365_v21  ;;  %v325_v29 = vpop.permute.xlu0 %324 }
 0x145   :  { %v359_v30 = vrot.slane %v325_v29, %v2172_v15  ;;  %v369_v32 = vsel %vm368_vm4, %v351_v19, %v367_v27 }
 0x146   :  { %v371_v33 = vsel %vm370_vm5, %v355_v24, %v369_v32 }
 0x147   :  { %v373_v35 = vsel %vm372_vm6, %v359_v30, %v371_v33 }
 0x148   :  { %v376_v36 = vsel %vm375_vm7, %v373_v35, -inf }
 0x149   :  { %377 = vmax.xlane.f32.xlu1 %v376_v36 }
 0x1d6   :  { %v378_v37 = vpop.xlane.xlu1 %377 }
 0x1d7   :  { %v383_v38 = vrot.slane %v378_v37, %v2186_v23  ;;  %v387_v39 = vrot.slane %v378_v37, %v2226_v8  ;;  %v391_v40 = vrot.slane %v378_v37, %v2233_v11  ;;  %v395_v62 = vrot.slane %v378_v37, %v2241_v22 }
 0x1d8   :  { %v399_v1 = vrot.slane %v378_v37, %v2237_v17  ;;  %v403_v4 = vrot.slane %v378_v37, %v2249_v28 }
 0x1d9   :  { %v420_v41 = vsub.f32 %v286_v44, %v383_v38  ;;  %v421_v60 = vsub.f32 %v287_v48, %v387_v39  ;;  %v422_v63 = vsub.f32 %v288_v50, %v391_v40  ;;  %v423_v2 = vsub.f32 %v289_v56, %v395_v62 }
 0x1da   :  { %v424_v6 = vsub.f32 %v2265_v46, %v399_v1  ;;  %v407_v44 = vrot.slane %v378_v37, %v2245_v25  ;;  %v425_v48 = vsub.f32 %v2279_v54, %v403_v4  ;;  %v411_v56 = vrot.slane %v378_v37, %v2254_v31 }
 0x1db   :  { %v428_v61 = vmul.f32 1.442695, %v420_v41  ;;  %v430_v0 = vmul.f32 1.442695, %v421_v60  ;;  %v432_v3 = vmul.f32 1.442695, %v422_v63 }
 0x1dc   :  { %v434_v7 = vmul.f32 1.442695, %v423_v2  ;;  %v436_v50 = vmul.f32 1.442695, %v424_v6  ;;  %v426_v14 = vsub.f32 %v2282_v55, %v407_v44  ;;  %v438_v19 = vmul.f32 1.442695, %v425_v48 }
 0x1dd   :  { %2051 = vpow2.f32 %v428_v61  ;;  %v427_v46 = vsub.f32 %v2290_v59, %v411_v56 }
 0x1de   :  { %2053 = vpow2.f32 %v430_v0  ;;  %v440_v24 = vmul.f32 1.442695, %v426_v14 }
 0x1df   :  { %2055 = vpow2.f32 %v432_v3  ;;  %v442_v54 = vmul.f32 1.442695, %v427_v46 }
 0x1e0   :  { %2057 = vpow2.f32 %v434_v7 }
 0x1e1   :  { %2059 = vpow2.f32 %v436_v50 }
 0x1e2   :  { %2061 = vpow2.f32 %v438_v19 }
 0x1e3   :  { %2063 = vpow2.f32 %v440_v24 }
 0x1e4   :  { %2065 = vpow2.f32 %v442_v54 }
 0x1e7   :  { %v2052_v9 = vpop.eup %2051 }
 0x1e8   :  { %453 = vperm.xlu0 %2040, %v2052_v9   ;;  %v2054_v10 = vpop.eup %2053 }
 0x1e9   :  { %v2056_v21 = vpop.eup %2055 }
 0x1ea   :  { %v2058_v27 = vpop.eup %2057 }
 0x1eb   :  { %v2060_v29 = vpop.eup %2059 }
 0x1ec   :  { %456 = vperm.xlu0 %2040, %v2054_v10   ;;  %v2062_v30 = vpop.eup %2061 }
 0x1ed   :  { %v2064_v32 = vpop.eup %2063 }
 0x1ee   :  { %v2066_v55 = vpop.eup %2065 }
 0x1f0   :  { %459 = vperm.xlu0 %2040, %v2056_v21  }
 0x1f4   :  { %462 = vperm.xlu0 %2040, %v2058_v27  }
 0x1f8   :  { %465 = vperm.xlu0 %2040, %v2060_v29  }
 0x1fc   :  { %468 = vperm.xlu0 %2040, %v2062_v30  }
 0x200   :  { %471 = vperm.xlu0 %2040, %v2064_v32  }
 0x204   :  { %474 = vperm.xlu0 %2040, %v2066_v55  }
 0x267   :  { %v454_v33 = vpop.permute.xlu0 %453 }
 0x268   :  { %v479_v41 = vrot.slane %v454_v33, %v2172_v15 }
 0x26b   :  { %v457_v35 = vpop.permute.xlu0 %456 }
 0x26c   :  { %v483_v39 = vrot.slane %v457_v35, %v2172_v15 }
 0x26e   :  { %v508_v63 = vsel %vm360_vm0, %v483_v39, %v479_v41 }
 0x26f   :  { %v460_v36 = vpop.permute.xlu0 %459 }
 0x270   :  { %v487_v40 = vrot.slane %v460_v36, %v2172_v15 }
 0x272   :  { %v509_v1 = vsel %vm362_vm1, %v487_v40, %v508_v63  ;;  %v2365_v63 = vld [vmem:[%s2754_s0 + $0x28] sm:$0xff]  }
 0x273   :  { %v463_v37 = vpop.permute.xlu0 %462 }
 0x274   :  { %v491_v60 = vrot.slane %v463_v37, %v2172_v15 }
 0x276   :  { %v510_v3 = vsel %vm364_vm2, %v491_v60, %v509_v1  ;;  %v2373_v1 = vld [vmem:[%s2754_s0 + $0x30] sm:$0xff]  }
 0x277   :  { %v466_v59 = vpop.permute.xlu0 %465 }
 0x278   :  { %v495_v61 = vrot.slane %v466_v59, %v2172_v15 }
 0x27a   :  { %v511_v4 = vsel %vm366_vm3, %v495_v61, %v510_v3 }
 0x27b   :  { %v469_v38 = vpop.permute.xlu0 %468 }
 0x27c   :  { %v499_v0 = vrot.slane %v469_v38, %v2172_v15 }
 0x27e   :  { %v512_v7 = vsel %vm368_vm4, %v499_v0, %v511_v4  ;;  %v1990_v0 = vld [vmem:[%s2758_s3 + $0x10] sm:$0xff]  }
 0x27f   :  { %v472_v62 = vpop.permute.xlu0 %471 }
 0x280   :  { %v503_v2 = vrot.slane %v472_v62, %v2172_v15 }
 0x282   :  { %v513_v48 = vsel %vm370_vm5, %v503_v2, %v512_v7  ;;  %v2764_v7 = vunpack.c.l.bf16 %v2365_v63 }
 0x283   :  { %v475_v6 = vpop.permute.xlu0 %474 }
 0x284   :  { %v507_v44 = vrot.slane %v475_v6, %v2172_v15 }
 0x286   :  { %v514_v50 = vsel %vm372_vm6, %v507_v44, %v513_v48  ;;  %v2384_v44 = vunpack.c.l.bf16 %v1990_v0  ;;  %v2761_v48 = vunpack.c.l.bf16 %v2373_v1 }
 0x287   :  { %v516_v56 = vsel %vm375_vm7, %v514_v50, 0.0 }
 0x288   :  { %517 = vadd.xlane.f32.xlu0 %v516_v56  ;;  %2800 = vst [vmem:[#allocation6_spill] sm:$0xff] %v2384_v44 }
 0x315   :  { %v518_v14 = vpop.xlane.xlu0 %517 }
 0x316   :  { %2067 = vrcp.f32 %v518_v14 }
 0x320   :  { %v2068_v19 = vpop.eup %2067 }
 0x321   :  { %v540_v46 = vrot.slane %v2068_v19, %v2237_v17  ;;  %v524_v24 = vrot.slane %v2068_v19, %v2186_v23  ;;  %v528_v35 = vrot.slane %v2068_v19, %v2226_v8  ;;  %v532_v37 = vrot.slane %v2068_v19, %v2233_v11 }
 0x322   :  { %v536_v38 = vrot.slane %v2068_v19, %v2241_v22  ;;  %v544_v40 = vrot.slane %v2068_v19, %v2249_v28  ;;  %v552_v60 = vrot.slane %v2068_v19, %v2254_v31 }
 0x323   :  { %v565_v54 = vmul.f32 %v2060_v29, %v540_v46  ;;  %v561_v33 = vmul.f32 %v2052_v9, %v524_v24  ;;  %v562_v36 = vmul.f32 %v2054_v10, %v528_v35  ;;  %v563_v59 = vmul.f32 %v2056_v21, %v532_v37  ;;  %v1907_v21 = vld [vmem:[%s2758_s3] sm:$0xff]  }
 0x324   :  { %v564_v39 = vmul.f32 %v2058_v27, %v536_v38  ;;  %v566_v41 = vmul.f32 %v2062_v30, %v544_v40  ;;  %v548_v29 = vrot.slane %v2068_v19, %v2245_v25  ;;  %v568_v10 = vmul.f32 %v2066_v55, %v552_v60  ;;  %v2351_v27 = vld [vmem:[%s2754_s0 + $0x20] sm:$0xff]   ;;  %v1989_v55 = vld [vmem:[%s2758_s3 + $0x8] sm:$0xff]  }
 0x325   :  { %591 = vperm.xlu0 %2040, %v565_v54   ;;  %571 = vperm.xlu1 %2041, %v561_v33   ;;  %v2353_v61 = vunpack.c.l.bf16 %v1907_v21  ;;  %v2766_v30 = vunpack.c.l.bf16 %v2351_v27  ;;  %v2356_v62 = vunpack.c.h.bf16 %v1907_v21  ;;  %v2381_v6 = vunpack.c.l.bf16 %v1989_v55 }
 0x326   :  { %v567_v9 = vmul.f32 %v2064_v32, %v548_v29  ;;  %v2765_v32 = vunpack.c.h.bf16 %v2351_v27  ;;  %v103_v46 = vadd.f32 %v2761_v48, %v2384_v44  ;;  %v2393_v24 = vunpack.c.h.bf16 %v1989_v55  ;;  %v1991_v29 = vld [vmem:[%s2758_s3 + $0x18] sm:$0xff]  }
 0x327   :  { %2797 = vst [vmem:[#allocation3_spill] sm:$0xff] %v2353_v61  ;;  %2798 = vst [vmem:[#allocation4_spill] sm:$0xff] %v2356_v62  ;;  %v99_v2 = vadd.f32 %v2766_v30, %v2353_v61  ;;  %v101_v19 = vadd.f32 %v2764_v7, %v2381_v6  ;;  %v2762_v54 = vunpack.c.h.bf16 %v2365_v63  ;;  %v2396_v38 = vunpack.c.h.bf16 %v1990_v0 }
 0x328   :  { %v100_v4 = vadd.f32 %v2765_v32, %v2356_v62  ;;  %2799 = vst [vmem:[#allocation5_spill] sm:$0xff] %v2381_v6  ;;  %2801 = vst [vmem:[#allocation7_spill] sm:$0xff] %v2393_v24 }
 0x329   :  { %576 = vperm.xlu1 %2041, %v562_v36   ;;  %2802 = vst [vmem:[#allocation8_spill] sm:$0xff] %v2396_v38 }
 0x32d   :  { %581 = vperm.xlu1 %2041, %v563_v59  }
 0x331   :  { %586 = vperm.xlu1 %2041, %v564_v39   ;;  %v2763_v39 = vunpack.c.h.bf16 %v2373_v1 }
 0x335   :  { %596 = vperm.xlu1 %2041, %v566_v41   ;;  %v102_v41 = vadd.f32 %v2762_v54, %v2393_v24 }
 0x339   :  { %601 = vperm.xlu1 %2041, %v567_v9   ;;  %v2408_v9 = vld [vmem:[%s2754_s0 + $0x38] sm:$0xff]  }
 0x33d   :  { %606 = vperm.xlu1 %2041, %v568_v10  }
 0x3a4   :  { %v572_v3 = vpop.permute.xlu1 %571  ;;  %v592_v33 = vpop.permute.xlu0 %591 }
 0x3a5   :  { %v609_v50 = vmul.f32 %v572_v3, %v99_v2  ;;  %v613_v40 = vmul.f32 %v592_v33, %v103_v46  ;;  %v104_v2 = vadd.f32 %v2763_v39, %v2396_v38  ;;  %v2413_v3 = vunpack.c.l.bf16 %v1991_v29 }
 0x3a7   :  { %v617_v36 = vrot.slane %v609_v50, 4  ;;  %2803 = vst [vmem:[#allocation9_spill] sm:$0xff] %v2413_v3 }
 0x3a8   :  { %v577_v56 = vpop.permute.xlu1 %576 }
 0x3a9   :  { %v610_v14 = vmul.f32 %v577_v56, %v100_v4  ;;  %v618_v21 = vadd.f32 %v617_v36, %v609_v50  ;;  %v2771_v4 = vunpack.c.l.bf16 %v2408_v9  ;;  %v641_v56 = vrot.slane %v613_v40, 4 }
 0x3aa   :  { %v2778_v36 = vunpack.c.h.bf16 %v2408_v9 }
 0x3ab   :  { %v623_v35 = vrot.slane %v610_v14, 4  ;;  %v619_v33 = vrot.slane %v618_v21, 2  ;;  %v105_v50 = vadd.f32 %v2771_v4, %v2413_v3 }
 0x3ac   :  { %v582_v37 = vpop.permute.xlu1 %581 }
 0x3ad   :  { %v611_v59 = vmul.f32 %v582_v37, %v101_v19  ;;  %v624_v60 = vadd.f32 %v623_v35, %v610_v14  ;;  %v2419_v35 = vunpack.c.h.bf16 %v1991_v29  ;;  %v620_v32 = vadd.f32 %v619_v33, %v618_v21 }
 0x3af   :  { %v629_v10 = vrot.slane %v611_v59, 4  ;;  %v625_v46 = vrot.slane %v624_v60, 2  ;;  %2804 = vst [vmem:[#allocation10_spill] sm:$0xff] %v2419_v35  ;;  %v621_v6 = vrot.slane %v620_v32, 1 }
 0x3b0   :  { %v587_v55 = vpop.permute.xlu1 %586 }
 0x3b1   :  { %v630_v0 = vadd.f32 %v629_v10, %v611_v59  ;;  %v612_v19 = vmul.f32 %v587_v55, %v102_v41  ;;  %v642_v59 = vadd.f32 %v641_v56, %v613_v40  ;;  %v626_v39 = vadd.f32 %v625_v46, %v624_v60 }
 0x3b2   :  { %v622_v33 = vadd.f32 %v621_v6, %v620_v32 }
 0x3b3   :  { %v631_v37 = vrot.slane %v630_v0, 2  ;;  %v635_v48 = vrot.slane %v612_v19, 4  ;;  %v627_v29 = vrot.slane %v626_v39, 1 }
 0x3b4   :  { %v597_v54 = vpop.permute.xlu1 %596 }
 0x3b5   :  { %v614_v14 = vmul.f32 %v597_v54, %v104_v2  ;;  %v636_v10 = vadd.f32 %v635_v48, %v612_v19  ;;  %v632_v41 = vadd.f32 %v631_v37, %v630_v0  ;;  %v106_v54 = vadd.f32 %v2778_v36, %v2419_v35 }
 0x3b6   :  { %v643_v2 = vrot.slane %v642_v59, 2  ;;  %v628_v46 = vadd.f32 %v627_v29, %v626_v39 }
 0x3b7   :  { %v647_v7 = vrot.slane %v614_v14, 4  ;;  %v637_v55 = vrot.slane %v636_v10, 2  ;;  %v633_v40 = vrot.slane %v632_v41, 1 }
 0x3b8   :  { %v602_v30 = vpop.permute.xlu1 %601  ;;  %v644_v19 = vadd.f32 %v643_v2, %v642_v59  ;;  %v673_v35 = vsel %vm360_vm0, %v628_v46, %v622_v33 }
 0x3b9   :  { %v648_v38 = vadd.f32 %v647_v7, %v614_v14  ;;  %v615_v24 = vmul.f32 %v602_v30, %v105_v50  ;;  %v638_v4 = vadd.f32 %v637_v55, %v636_v10  ;;  %v634_v37 = vadd.f32 %v633_v40, %v632_v41 }
 0x3ba   :  { %v645_v55 = vrot.slane %v644_v19, 1 }
 0x3bb   :  { %v649_v3 = vrot.slane %v648_v38, 2  ;;  %v653_v44 = vrot.slane %v615_v24, 4  ;;  %v639_v60 = vrot.slane %v638_v4, 1  ;;  %v674_v31 = vsel %vm362_vm1, %v634_v37, %v673_v35 }
 0x3bc   :  { %v607_v48 = vpop.permute.xlu1 %606  ;;  %v646_v39 = vadd.f32 %v645_v55, %v644_v19 }
 0x3bd   :  { %v650_v56 = vadd.f32 %v649_v3, %v648_v38  ;;  %v654_v21 = vadd.f32 %v653_v44, %v615_v24  ;;  %v616_v0 = vmul.f32 %v607_v48, %v106_v54  ;;  %v640_v14 = vadd.f32 %v639_v60, %v638_v4 }
 0x3bf   :  { %v655_v7 = vrot.slane %v654_v21, 2  ;;  %v659_v30 = vrot.slane %v616_v0, 4  ;;  %v651_v50 = vrot.slane %v650_v56, 1  ;;  %v675_v44 = vsel %vm364_vm2, %v640_v14, %v674_v31 }
 0x3c0   :  { %v676_v32 = vsel %vm366_vm3, %v646_v39, %v675_v44 }
 0x3c1   :  { %v656_v36 = vadd.f32 %v655_v7, %v654_v21  ;;  %v660_v10 = vadd.f32 %v659_v30, %v616_v0  ;;  %v652_v24 = vadd.f32 %v651_v50, %v650_v56  ;;  %v2807_v0 = vunpack.c.l.bf16 %v2365_v63 }
 0x3c3   :  { %v657_v62 = vrot.slane %v656_v36, 1  ;;  %v661_v61 = vrot.slane %v660_v10, 2  ;;  %v677_v6 = vsel %vm368_vm4, %v652_v24, %v676_v32  ;;  %v684_v19 = vadd.f32 %v2807_v0, %v2179_v18 }
 0x3c5   :  { %v662_v38 = vadd.f32 %v661_v61, %v660_v10  ;;  %v658_v3 = vadd.f32 %v657_v62, %v656_v36  ;;  %v2805_v62 = vunpack.c.l.bf16 %v2351_v27 }
 0x3c7   :  { %v663_v59 = vrot.slane %v662_v38, 1  ;;  %v678_v41 = vsel %vm370_vm5, %v658_v3, %v677_v6  ;;  %v682_v35 = vadd.f32 %v2805_v62, %v2169_v13  ;;  %v2810_v6 = vunpack.c.h.bf16 %v2373_v1 }
 0x3c9   :  { %v664_v4 = vadd.f32 %v663_v59, %v662_v38  ;;  %v2809_v38 = vunpack.c.l.bf16 %v2373_v1 }
 0x3cb   :  { %v679_v54 = vsel %vm372_vm6, %v664_v4, %v678_v41  ;;  %v686_v39 = vadd.f32 %v2809_v38, %v2181_v20 }
 0x3cc   :  { %v2433_v2 = vadd.f32 %v679_v54, %v2167_v12  ;;  %v2806_v12 = vunpack.c.h.bf16 %v2351_v27  ;;  %v2808_v27 = vunpack.c.h.bf16 %v2365_v63  ;;  %v687_v63 = vadd.f32 %v2810_v6, %v2190_v26 }
 0x3ce   :  { %v723_v31 = vrot.slane %v2433_v2, %v2175_v16  ;;  %v716_v61 = vcombine.high %v2433_v2, %v2433_v2  ;;  %v683_v60 = vadd.f32 %v2806_v12, %v2196_v34  ;;  %v685_v10 = vadd.f32 %v2808_v27, %v2208_v43 }
 0x3d0   :  { %v739_v36 = vrot.slane %v723_v31, %v2175_v16  ;;  %v731_v29 = vcombine.high %v723_v31, %v723_v31  ;;  %v730_v40 = vrot.slane %v716_v61, %v2175_v16  ;;  %v2811_v31 = vunpack.c.l.bf16 %v2408_v9 }
 0x3d2   :  { %v768_v48 = vrot.slane %v739_v36, %v2186_v23  ;;  %v753_v56 = vrot.slane %v731_v29, %v2175_v16  ;;  %v761_v21 = vcombine.high %v739_v36, %v739_v36  ;;  %v746_v46 = vrot.slane %v730_v40, %v2175_v16 }
 0x3d3   :  { %v732_v7 = vcombine.high %v730_v40, %v730_v40  ;;  %v688_v61 = vadd.f32 %v2811_v31, %v2214_v51  ;;  %v2812_v36 = vunpack.c.h.bf16 %v2408_v9 }
 0x3d4   :  { %v805_v30 = vmul.f32 %v768_v48, %v682_v35  ;;  %v772_v33 = vrot.slane %v753_v56, %v2186_v23  ;;  %v776_v37 = vrot.slane %v761_v21, %v2186_v23  ;;  %v763_v14 = vcombine.high %v753_v56, %v753_v56 }
 0x3d5   :  { %v760_v44 = vrot.slane %v732_v7, %v2175_v16  ;;  %v784_v3 = vrot.slane %v746_v46, %v2186_v23  ;;  %v762_v59 = vcombine.high %v746_v46, %v746_v46  ;;  %v689_v29 = vadd.f32 %v2812_v36, %v2218_v58 }
 0x3d6   :  { %813 = vadd.xlane.f32.xlu1 %v805_v30  ;;  %v806_v50 = vmul.f32 %v772_v33, %v683_v60  ;;  %v780_v55 = vrot.slane %v763_v14, %v2186_v23  ;;  %v807_v24 = vmul.f32 %v776_v37, %v684_v19 }
 0x3d7   :  { %v788_v4 = vrot.slane %v760_v44, %v2186_v23  ;;  %v764_v41 = vcombine.high %v760_v44, %v760_v44  ;;  %v809_v54 = vmul.f32 %v784_v3, %v686_v39  ;;  %v792_v62 = vrot.slane %v762_v59, %v2186_v23 }
 0x3d8   :  { %815 = vadd.xlane.f32.xlu0 %v806_v50  ;;  %v808_v32 = vmul.f32 %v780_v55, %v685_v10 }
 0x3d9   :  { %v810_v35 = vmul.f32 %v788_v4, %v687_v63  ;;  %v796_v1 = vrot.slane %v764_v41, %v2186_v23  ;;  %v811_v40 = vmul.f32 %v792_v62, %v688_v61 }
 0x3da   :  { %817 = vadd.xlane.f32.xlu1 %v807_v24 }
 0x3db   :  { %v812_v48 = vmul.f32 %v796_v1, %v689_v29 }
 0x3dc   :  { %819 = vadd.xlane.f32.xlu0 %v808_v32 }
 0x3de   :  { %821 = vadd.xlane.f32.xlu1 %v809_v54 }
 0x3e0   :  { %823 = vadd.xlane.f32.xlu0 %v810_v35 }
 0x3e2   :  { %825 = vadd.xlane.f32.xlu1 %v811_v40 }
 0x3e4   :  { %827 = vadd.xlane.f32.xlu0 %v812_v48 }
 0x463   :  { %v814_v12 = vpop.xlane.xlu1 %813 }
 0x464   :  { %v829_v60 = vadd.f32 %v814_v12, %v2257_v42 }
 0x465   :  { %v816_v56 = vpop.xlane.xlu0 %815 }
 0x466   :  { %v830_v21 = vadd.f32 %v816_v56, %v2260_v45  ;;  %846 = vperm.xlu1 %2041, %v829_v60  }
 0x467   :  { %v818_v0 = vpop.xlane.xlu1 %817 }
 0x468   :  { %v831_v19 = vadd.f32 %v818_v0, %v2267_v47  ;;  %849 = vperm.xlu0 %2040, %v830_v21  }
 0x469   :  { %v820_v9 = vpop.xlane.xlu0 %819 }
 0x46a   :  { %852 = vperm.xlu1 %2041, %v831_v19   ;;  %v832_v37 = vadd.f32 %v820_v9, %v2271_v49 }
 0x46b   :  { %v822_v46 = vpop.xlane.xlu1 %821 }
 0x46c   :  { %v833_v7 = vadd.f32 %v822_v46, %v2262_v5 }
 0x46d   :  { %v824_v30 = vpop.xlane.xlu0 %823 }
 0x46e   :  { %v834_v33 = vadd.f32 %v824_v30, %v2276_v53  ;;  %858 = vperm.xlu1 %2041, %v833_v7  }
 0x46f   :  { %v826_v14 = vpop.xlane.xlu1 %825 }
 0x470   :  { %861 = vperm.xlu0 %2040, %v834_v33   ;;  %v835_v10 = vadd.f32 %v826_v14, %v2274_v52 }
 0x471   :  { %v828_v50 = vpop.xlane.xlu0 %827 }
 0x472   :  { %v2483_v27 = vadd.f32 %v828_v50, %v2287_v57  ;;  %855 = vperm.xlu1 %2041, %v832_v37  }
 0x474   :  { %867 = vperm.xlu0 %2040, %v2483_v27  }
 0x476   :  { %864 = vperm.xlu1 %2041, %v835_v10  }
 0x4e5   :  { %v847_v55 = vpop.permute.xlu1 %846 }
 0x4e6   :  { %v872_v3 = vrot.slane %v847_v55, %v2172_v15 }
 0x4e7   :  { %v850_v44 = vpop.permute.xlu0 %849 }
 0x4e8   :  { %v876_v38 = vrot.slane %v850_v44, %v2172_v15 }
 0x4e9   :  { %v853_v24 = vpop.permute.xlu1 %852 }
 0x4ea   :  { %v880_v59 = vrot.slane %v853_v24, %v2172_v15  ;;  %v901_v6 = vsel %vm360_vm0, %v876_v38, %v872_v3 }
 0x4ec   :  { %v902_v41 = vsel %vm362_vm1, %v880_v59, %v901_v6 }
 0x4ed   :  { %v859_v39 = vpop.permute.xlu1 %858 }
 0x4ee   :  { %v888_v54 = vrot.slane %v859_v39, %v2172_v15 }
 0x4ef   :  { %v862_v32 = vpop.permute.xlu0 %861 }
 0x4f0   :  { %v892_v31 = vrot.slane %v862_v32, %v2172_v15 }
 0x4f1   :  { %v856_v63 = vpop.permute.xlu1 %855 }
 0x4f2   :  { %v884_v4 = vrot.slane %v856_v63, %v2172_v15 }
 0x4f3   :  { %v868_v62 = vpop.permute.xlu0 %867 }
 0x4f4   :  { %v903_v61 = vsel %vm364_vm2, %v884_v4, %v902_v41  ;;  %v900_v40 = vrot.slane %v868_v62, %v2172_v15 }
 0x4f5   :  { %v904_v35 = vsel %vm366_vm3, %v888_v54, %v903_v61  ;;  %v865_v36 = vpop.permute.xlu1 %864  ;;  %v2813_v54 = vld [vmem:[#allocation2_spill] sm:$0xff] }
 0x4f6   :  { %v896_v29 = vrot.slane %v865_v36, %v2172_v15  ;;  %v905_v1 = vsel %vm368_vm4, %v892_v31, %v904_v35 }
 0x4f8   :  { %v906_v48 = vsel %vm370_vm5, %v896_v29, %v905_v1 }
 0x4f9   :  { %v907_v12 = vsel %vm372_vm6, %v900_v40, %v906_v48 }
 0x4fa   :  { %v909_v56 = vsel %vm375_vm7, %v907_v12, -inf }
 0x4fb   :  { %910 = vmax.xlane.f32.xlu1 %v909_v56 }
 0x588   :  { %v911_v0 = vpop.xlane.xlu1 %910 }
 0x589   :  { %v916_v9 = vrot.slane %v911_v0, %v2186_v23  ;;  %v920_v46 = vrot.slane %v911_v0, %v2226_v8  ;;  %v924_v30 = vrot.slane %v911_v0, %v2233_v11  ;;  %v928_v44 = vrot.slane %v911_v0, %v2241_v22 }
 0x58a   :  { %v932_v39 = vrot.slane %v911_v0, %v2237_v17  ;;  %v936_v32 = vrot.slane %v911_v0, %v2249_v28  ;;  %v944_v31 = vrot.slane %v911_v0, %v2813_v54 }
 0x58b   :  { %v953_v14 = vsub.f32 %v829_v60, %v916_v9  ;;  %v954_v50 = vsub.f32 %v830_v21, %v920_v46  ;;  %v955_v24 = vsub.f32 %v831_v19, %v924_v30  ;;  %v956_v3 = vsub.f32 %v832_v37, %v928_v44 }
 0x58c   :  { %v957_v6 = vsub.f32 %v833_v7, %v932_v39  ;;  %v940_v60 = vrot.slane %v911_v0, %v2245_v25  ;;  %v958_v21 = vsub.f32 %v834_v33, %v936_v32  ;;  %v960_v7 = vsub.f32 %v2483_v27, %v944_v31 }
 0x58d   :  { %v961_v55 = vmul.f32 1.442695, %v953_v14  ;;  %v963_v38 = vmul.f32 1.442695, %v954_v50  ;;  %v965_v59 = vmul.f32 1.442695, %v955_v24 }
 0x58e   :  { %v967_v63 = vmul.f32 1.442695, %v956_v3  ;;  %v969_v41 = vmul.f32 1.442695, %v957_v6  ;;  %v959_v61 = vsub.f32 %v835_v10, %v940_v60  ;;  %v971_v37 = vmul.f32 1.442695, %v958_v21 }
 0x58f   :  { %2069 = vpow2.f32 %v961_v55  ;;  %v975_v29 = vmul.f32 1.442695, %v960_v7 }
 0x590   :  { %2071 = vpow2.f32 %v963_v38  ;;  %v973_v35 = vmul.f32 1.442695, %v959_v61 }
 0x591   :  { %2073 = vpow2.f32 %v965_v59 }
 0x592   :  { %2075 = vpow2.f32 %v967_v63 }
 0x593   :  { %2077 = vpow2.f32 %v969_v41 }
 0x594   :  { %2079 = vpow2.f32 %v971_v37 }
 0x595   :  { %2081 = vpow2.f32 %v973_v35 }
 0x596   :  { %2083 = vpow2.f32 %v975_v29 }
 0x599   :  { %v2070_v4 = vpop.eup %2069 }
 0x59a   :  { %986 = vperm.xlu0 %2040, %v2070_v4   ;;  %v2072_v19 = vpop.eup %2071 }
 0x59b   :  { %v2074_v62 = vpop.eup %2073 }
 0x59c   :  { %v2076_v36 = vpop.eup %2075 }
 0x59d   :  { %v2078_v33 = vpop.eup %2077 }
 0x59e   :  { %989 = vperm.xlu0 %2040, %v2072_v19   ;;  %v2080_v1 = vpop.eup %2079 }
 0x59f   :  { %v2082_v40 = vpop.eup %2081 }
 0x5a0   :  { %v2084_v10 = vpop.eup %2083 }
 0x5a2   :  { %992 = vperm.xlu0 %2040, %v2074_v62  }
 0x5a6   :  { %995 = vperm.xlu0 %2040, %v2076_v36  }
 0x5aa   :  { %998 = vperm.xlu0 %2040, %v2078_v33  }
 0x5ae   :  { %1001 = vperm.xlu0 %2040, %v2080_v1  }
 0x5b2   :  { %1004 = vperm.xlu0 %2040, %v2082_v40  }
 0x5b6   :  { %1007 = vperm.xlu0 %2040, %v2084_v10  }
 0x619   :  { %v987_v48 = vpop.permute.xlu0 %986 }
 0x61a   :  { %v1012_v14 = vrot.slane %v987_v48, %v2172_v15 }
 0x61d   :  { %v990_v12 = vpop.permute.xlu0 %989 }
 0x61e   :  { %v1016_v46 = vrot.slane %v990_v12, %v2172_v15 }
 0x620   :  { %v1041_v24 = vsel %vm360_vm0, %v1016_v46, %v1012_v14 }
 0x621   :  { %v993_v56 = vpop.permute.xlu0 %992 }
 0x622   :  { %v1020_v30 = vrot.slane %v993_v56, %v2172_v15 }
 0x624   :  { %v1042_v39 = vsel %vm362_vm1, %v1020_v30, %v1041_v24 }
 0x625   :  { %v996_v0 = vpop.permute.xlu0 %995 }
 0x626   :  { %v1024_v50 = vrot.slane %v996_v0, %v2172_v15 }
 0x628   :  { %v1043_v59 = vsel %vm364_vm2, %v1024_v50, %v1042_v39 }
 0x629   :  { %v999_v27 = vpop.permute.xlu0 %998 }
 0x62a   :  { %v1028_v55 = vrot.slane %v999_v27, %v2172_v15 }
 0x62c   :  { %v1044_v32 = vsel %vm366_vm3, %v1028_v55, %v1043_v59 }
 0x62d   :  { %v1002_v9 = vpop.permute.xlu0 %1001 }
 0x62e   :  { %v1032_v38 = vrot.slane %v1002_v9, %v2172_v15 }
 0x630   :  { %v1045_v63 = vsel %vm368_vm4, %v1032_v38, %v1044_v32  ;;  %v2815_v38 = vld [vmem:[#allocation4_spill] sm:$0xff] }
 0x631   :  { %v1005_v44 = vpop.permute.xlu0 %1004 }
 0x632   :  { %v1036_v3 = vrot.slane %v1005_v44, %v2172_v15 }
 0x634   :  { %v1046_v21 = vsel %vm370_vm5, %v1036_v3, %v1045_v63 }
 0x635   :  { %v1008_v6 = vpop.permute.xlu0 %1007 }
 0x636   :  { %v1040_v60 = vrot.slane %v1008_v6, %v2172_v15 }
 0x638   :  { %v1047_v41 = vsel %vm372_vm6, %v1040_v60, %v1046_v21  ;;  %v2816_v60 = vld [vmem:[#allocation5_spill] sm:$0xff] }
 0x639   :  { %v1049_v31 = vsel %vm375_vm7, %v1047_v41, 0.0  ;;  %v2817_v41 = vld [vmem:[#allocation6_spill] sm:$0xff] }
 0x63a   :  { %1050 = vadd.xlane.f32.xlu0 %v1049_v31 }
 0x6c7   :  { %v1051_v61 = vpop.xlane.xlu0 %1050 }
 0x6c8   :  { %2085 = vrcp.f32 %v1051_v61 }
 0x6d2   :  { %v2086_v37 = vpop.eup %2085 }
 0x6d3   :  { %v1073_v7 = vrot.slane %v2086_v37, %v2237_v17  ;;  %v1057_v35 = vrot.slane %v2086_v37, %v2186_v23  ;;  %v1061_v12 = vrot.slane %v2086_v37, %v2226_v8  ;;  %v1065_v0 = vrot.slane %v2086_v37, %v2233_v11 }
 0x6d4   :  { %v1069_v9 = vrot.slane %v2086_v37, %v2241_v22  ;;  %v1077_v30 = vrot.slane %v2086_v37, %v2249_v28  ;;  %v1085_v50 = vrot.slane %v2086_v37, %v2813_v54 }
 0x6d5   :  { %v1098_v29 = vmul.f32 %v2078_v33, %v1073_v7  ;;  %v1094_v48 = vmul.f32 %v2070_v4, %v1057_v35  ;;  %v1095_v56 = vmul.f32 %v2072_v19, %v1061_v12  ;;  %v1096_v27 = vmul.f32 %v2074_v62, %v1065_v0  ;;  %v2539_v62 = vld [vmem:[%s2754_s0 + $0x40] sm:$0xff]   ;;  %v2818_v0 = vld [vmem:[#allocation7_spill] sm:$0xff] }
 0x6d6   :  { %v1097_v46 = vmul.f32 %v2076_v36, %v1069_v9  ;;  %v1099_v14 = vmul.f32 %v2080_v1, %v1077_v30  ;;  %v1081_v33 = vrot.slane %v2086_v37, %v2245_v25  ;;  %v1101_v19 = vmul.f32 %v2084_v10, %v1085_v50  ;;  %v2546_v1 = vld [vmem:[%s2754_s0 + $0x48] sm:$0xff]   ;;  %v2575_v9 = vld [vmem:[%s2754_s0 + $0x58] sm:$0xff]   ;;  %v2819_v50 = vld [vmem:[#allocation8_spill] sm:$0xff] }
 0x6d7   :  { %1124 = vperm.xlu0 %2040, %v1098_v29   ;;  %1104 = vperm.xlu1 %2041, %v1094_v48   ;;  %v2792_v36 = vunpack.c.l.bf16 %v2539_v62  ;;  %v2791_v55 = vunpack.c.h.bf16 %v2539_v62  ;;  %v2814_v10 = vld [vmem:[#allocation3_spill] sm:$0xff]  ;;  %v2790_v3 = vunpack.c.l.bf16 %v2546_v1  ;;  %v2788_v61 = vunpack.c.h.bf16 %v2546_v1 }
 0x6d8   :  { %v1100_v4 = vmul.f32 %v2082_v40, %v1081_v33  ;;  %v2551_v40 = vld [vmem:[%s2754_s0 + $0x50] sm:$0xff]  }
 0x6d9   :  { %v707_v44 = vadd.f32 %v2792_v36, %v2814_v10  ;;  %v708_v39 = vadd.f32 %v2791_v55, %v2815_v38  ;;  %v2787_v59 = vunpack.c.l.bf16 %v2551_v40  ;;  %v709_v21 = vadd.f32 %v2790_v3, %v2816_v60 }
 0x6da   :  { %v2789_v12 = vunpack.c.h.bf16 %v2551_v40 }
 0x6db   :  { %1109 = vperm.xlu1 %2041, %v1095_v56   ;;  %v711_v31 = vadd.f32 %v2787_v59, %v2817_v41 }
 0x6df   :  { %1114 = vperm.xlu1 %2041, %v1096_v27   ;;  %v710_v27 = vadd.f32 %v2788_v61, %v2818_v0  ;;  %v2820_v61 = vld [vmem:[#allocation9_spill] sm:$0xff] }
 0x6e3   :  { %1119 = vperm.xlu1 %2041, %v1097_v46  }
 0x6e7   :  { %1129 = vperm.xlu1 %2041, %v1099_v14  }
 0x6eb   :  { %1134 = vperm.xlu1 %2041, %v1100_v4  }
 0x6ef   :  { %1139 = vperm.xlu1 %2041, %v1101_v19   ;;  %v712_v19 = vadd.f32 %v2789_v12, %v2819_v50  ;;  %v2821_v50 = vld [vmem:[#allocation10_spill] sm:$0xff] }
 0x756   :  { %v1105_v24 = vpop.permute.xlu1 %1104  ;;  %v1125_v37 = vpop.permute.xlu0 %1124 }
 0x757   :  { %v1142_v32 = vmul.f32 %v1105_v24, %v707_v44  ;;  %v1146_v56 = vmul.f32 %v1125_v37, %v711_v31  ;;  %v2793_v44 = vunpack.c.l.bf16 %v2575_v9 }
 0x759   :  { %v1150_v35 = vrot.slane %v1142_v32, 4  ;;  %v1174_v24 = vrot.slane %v1146_v56, 4 }
 0x75a   :  { %v1110_v6 = vpop.permute.xlu1 %1109 }
 0x75b   :  { %v1143_v63 = vmul.f32 %v1110_v6, %v708_v39  ;;  %v1151_v14 = vadd.f32 %v1150_v35, %v1142_v32  ;;  %v713_v32 = vadd.f32 %v2793_v44, %v2820_v61 }
 0x75d   :  { %v1156_v7 = vrot.slane %v1143_v63, 4 }
 0x75e   :  { %v1115_v29 = vpop.permute.xlu1 %1114 }
 0x75f   :  { %v1144_v48 = vmul.f32 %v1115_v29, %v709_v21  ;;  %v1157_v46 = vadd.f32 %v1156_v7, %v1143_v63  ;;  %v1152_v21 = vrot.slane %v1151_v14, 2  ;;  %v2794_v63 = vunpack.c.h.bf16 %v2575_v9 }
 0x760   :  { %v1175_v7 = vadd.f32 %v1174_v24, %v1146_v56 }
 0x761   :  { %v1162_v30 = vrot.slane %v1144_v48, 4  ;;  %v1158_v6 = vrot.slane %v1157_v46, 2  ;;  %v1153_v12 = vadd.f32 %v1152_v21, %v1151_v14 }
 0x762   :  { %v1120_v33 = vpop.permute.xlu1 %1119 }
 0x763   :  { %v1163_v4 = vadd.f32 %v1162_v30, %v1144_v48  ;;  %v1145_v39 = vmul.f32 %v1120_v33, %v710_v27  ;;  %v1159_v48 = vadd.f32 %v1158_v6, %v1157_v46  ;;  %v1154_v60 = vrot.slane %v1153_v12, 1 }
 0x765   :  { %v1164_v31 = vrot.slane %v1163_v4, 2  ;;  %v1168_v37 = vrot.slane %v1145_v39, 4  ;;  %v1160_v41 = vrot.slane %v1159_v48, 1 }
 0x766   :  { %v1130_v29 = vpop.permute.xlu1 %1129 }
 0x767   :  { %v1147_v59 = vmul.f32 %v1130_v29, %v712_v19  ;;  %v1169_v35 = vadd.f32 %v1168_v37, %v1145_v39  ;;  %v1165_v3 = vadd.f32 %v1164_v31, %v1163_v4  ;;  %v714_v19 = vadd.f32 %v2794_v63, %v2821_v50 }
 0x768   :  { %v1176_v29 = vrot.slane %v1175_v7, 2  ;;  %v1161_v21 = vadd.f32 %v1160_v41, %v1159_v48  ;;  %v1155_v37 = vadd.f32 %v1154_v60, %v1153_v12 }
 0x769   :  { %v1180_v30 = vrot.slane %v1147_v59, 4  ;;  %v1170_v55 = vrot.slane %v1169_v35, 2  ;;  %v1166_v56 = vrot.slane %v1165_v3, 1 }
 0x76a   :  { %v1135_v27 = vpop.permute.xlu1 %1134  ;;  %v1177_v6 = vadd.f32 %v1176_v29, %v1175_v7  ;;  %v1206_v50 = vsel %vm360_vm0, %v1161_v21, %v1155_v37 }
 0x76b   :  { %v1181_v33 = vadd.f32 %v1180_v30, %v1147_v59  ;;  %v1148_v36 = vmul.f32 %v1135_v27, %v713_v32  ;;  %v1171_v0 = vadd.f32 %v1170_v55, %v1169_v35  ;;  %v1167_v32 = vadd.f32 %v1166_v56, %v1165_v3 }
 0x76c   :  { %v1178_v35 = vrot.slane %v1177_v6, 1 }
 0x76d   :  { %v1182_v44 = vrot.slane %v1181_v33, 2  ;;  %v1186_v61 = vrot.slane %v1148_v36, 4  ;;  %v1172_v46 = vrot.slane %v1171_v0, 1  ;;  %v1207_v54 = vsel %vm362_vm1, %v1167_v32, %v1206_v50 }
 0x76e   :  { %v1140_v24 = vpop.permute.xlu1 %1139  ;;  %v1179_v41 = vadd.f32 %v1178_v35, %v1177_v6  ;;  %v2826_v35 = vunpack.c.l.bf16 %v2551_v40 }
 0x76f   :  { %v1183_v39 = vadd.f32 %v1182_v44, %v1181_v33  ;;  %v1187_v14 = vadd.f32 %v1186_v61, %v1148_v36  ;;  %v1149_v4 = vmul.f32 %v1140_v24, %v714_v19  ;;  %v1173_v30 = vadd.f32 %v1172_v46, %v1171_v0 }
 0x771   :  { %v1188_v59 = vrot.slane %v1187_v14, 2  ;;  %v1192_v31 = vrot.slane %v1149_v4, 4  ;;  %v1184_v27 = vrot.slane %v1183_v39, 1  ;;  %v1208_v36 = vsel %vm364_vm2, %v1173_v30, %v1207_v54 }
 0x772   :  { %v1209_v3 = vsel %vm366_vm3, %v1179_v41, %v1208_v36  ;;  %v1219_v36 = vadd.f32 %v2826_v35, %v2181_v20 }
 0x773   :  { %v1189_v63 = vadd.f32 %v1188_v59, %v1187_v14  ;;  %v1193_v55 = vadd.f32 %v1192_v31, %v1149_v4  ;;  %v1185_v61 = vadd.f32 %v1184_v27, %v1183_v39  ;;  %v2824_v4 = vunpack.c.l.bf16 %v2546_v1 }
 0x775   :  { %v1190_v38 = vrot.slane %v1189_v63, 1  ;;  %v1194_v10 = vrot.slane %v1193_v55, 2  ;;  %v1210_v60 = vsel %vm368_vm4, %v1185_v61, %v1209_v3  ;;  %v1217_v6 = vadd.f32 %v2824_v4, %v2179_v18 }
 0x776   :  { %v2828_v3 = vunpack.c.l.bf16 %v2575_v9 }
 0x777   :  { %v1195_v44 = vadd.f32 %v1194_v10, %v1193_v55  ;;  %v1191_v7 = vadd.f32 %v1190_v38, %v1189_v63  ;;  %v2822_v38 = vunpack.c.l.bf16 %v2539_v62 }
 0x779   :  { %v1196_v48 = vrot.slane %v1195_v44, 1  ;;  %v1211_v0 = vsel %vm370_vm5, %v1191_v7, %v1210_v60  ;;  %v1215_v50 = vadd.f32 %v2822_v38, %v2169_v13  ;;  %v2827_v7 = vunpack.c.h.bf16 %v2551_v40 }
 0x77a   :  { %v1221_v60 = vadd.f32 %v2828_v3, %v2214_v51 }
 0x77b   :  { %v1197_v12 = vadd.f32 %v1196_v48, %v1195_v44 }
 0x77d   :  { %v1212_v33 = vsel %vm372_vm6, %v1197_v12, %v1211_v0  ;;  %v2829_v0 = vunpack.c.h.bf16 %v2575_v9 }
 0x77e   :  { %v2596_v19 = vadd.f32 %v1212_v33, %v2433_v2  ;;  %v2823_v2 = vunpack.c.h.bf16 %v2539_v62 }
 0x77f   :  { %v1222_v33 = vadd.f32 %v2829_v0, %v2218_v58 }
 0x780   :  { %v1256_v54 = vrot.slane %v2596_v19, %v2175_v16  ;;  %v1249_v10 = vcombine.high %v2596_v19, %v2596_v19  ;;  %v1216_v46 = vadd.f32 %v2823_v2, %v2196_v34  ;;  %v2825_v34 = vunpack.c.h.bf16 %v2546_v1 }
 0x781   :  { %v1220_v1 = vadd.f32 %v2827_v7, %v2190_v26 }
 0x782   :  { %v1272_v63 = vrot.slane %v1256_v54, %v2175_v16  ;;  %v1264_v29 = vcombine.high %v1256_v54, %v1256_v54  ;;  %v1263_v56 = vrot.slane %v1249_v10, %v2175_v16  ;;  %v1218_v62 = vadd.f32 %v2825_v34, %v2208_v43 }
 0x784   :  { %v1301_v24 = vrot.slane %v1272_v63, %v2186_v23  ;;  %v1286_v39 = vrot.slane %v1264_v29, %v2175_v16  ;;  %v1294_v14 = vcombine.high %v1272_v63, %v1272_v63  ;;  %v1279_v13 = vrot.slane %v1263_v56, %v2175_v16 }
 0x785   :  { %v1265_v21 = vcombine.high %v1263_v56, %v1263_v56 }
 0x786   :  { %v1338_v59 = vmul.f32 %v1301_v24, %v1215_v50  ;;  %v1305_v31 = vrot.slane %v1286_v39, %v2186_v23  ;;  %v1309_v37 = vrot.slane %v1294_v14, %v2186_v23  ;;  %v1296_v32 = vcombine.high %v1286_v39, %v1286_v39 }
 0x787   :  { %v1293_v55 = vrot.slane %v1265_v21, %v2175_v16  ;;  %v1317_v61 = vrot.slane %v1279_v13, %v2186_v23  ;;  %v1295_v44 = vcombine.high %v1279_v13, %v1279_v13 }
 0x788   :  { %1346 = vadd.xlane.f32.xlu1 %v1338_v59  ;;  %v1339_v30 = vmul.f32 %v1305_v31, %v1216_v46  ;;  %v1313_v27 = vrot.slane %v1296_v32, %v2186_v23  ;;  %v1340_v18 = vmul.f32 %v1309_v37, %v1217_v6 }
 0x789   :  { %v1321_v43 = vrot.slane %v1293_v55, %v2186_v23  ;;  %v1297_v48 = vcombine.high %v1293_v55, %v1293_v55  ;;  %v1342_v16 = vmul.f32 %v1317_v61, %v1219_v36  ;;  %v1325_v20 = vrot.slane %v1295_v44, %v2186_v23 }
 0x78a   :  { %1348 = vadd.xlane.f32.xlu0 %v1339_v30  ;;  %v1341_v41 = vmul.f32 %v1313_v27, %v1218_v62 }
 0x78b   :  { %v1343_v12 = vmul.f32 %v1321_v43, %v1220_v1  ;;  %v1329_v40 = vrot.slane %v1297_v48, %v2186_v23  ;;  %v1344_v26 = vmul.f32 %v1325_v20, %v1221_v60 }
 0x78c   :  { %1350 = vadd.xlane.f32.xlu1 %v1340_v18 }
 0x78d   :  { %v1345_v54 = vmul.f32 %v1329_v40, %v1222_v33 }
 0x78e   :  { %1352 = vadd.xlane.f32.xlu0 %v1341_v41 }
 0x790   :  { %1354 = vadd.xlane.f32.xlu1 %v1342_v16 }
 0x792   :  { %1356 = vadd.xlane.f32.xlu0 %v1343_v12 }
 0x794   :  { %1358 = vadd.xlane.f32.xlu1 %v1344_v26 }
 0x796   :  { %1360 = vadd.xlane.f32.xlu0 %v1345_v54 }
 0x815   :  { %v1347_v10 = vpop.xlane.xlu1 %1346 }
 0x816   :  { %v1362_v38 = vadd.f32 %v1347_v10, %v2257_v42 }
 0x817   :  { %v1349_v50 = vpop.xlane.xlu0 %1348 }
 0x818   :  { %v1363_v51 = vadd.f32 %v1349_v50, %v2260_v45  ;;  %1379 = vperm.xlu1 %2041, %v1362_v38  }
 0x819   :  { %v1351_v63 = vpop.xlane.xlu1 %1350 }
 0x81a   :  { %v1364_v29 = vadd.f32 %v1351_v63, %v2267_v47  ;;  %1382 = vperm.xlu0 %2040, %v1363_v51  }
 0x81b   :  { %v1353_v9 = vpop.xlane.xlu0 %1352 }
 0x81c   :  { %1385 = vperm.xlu1 %2041, %v1364_v29   ;;  %v1365_v46 = vadd.f32 %v1353_v9, %v2271_v49  ;;  %v2830_v9 = vld [vmem:[#allocation2_spill] sm:$0xff] }
 0x81d   :  { %v1355_v58 = vpop.xlane.xlu1 %1354 }
 0x81e   :  { %v1366_v56 = vadd.f32 %v1355_v58, %v2262_v5 }
 0x81f   :  { %v1357_v24 = vpop.xlane.xlu0 %1356 }
 0x820   :  { %v1367_v2 = vadd.f32 %v1357_v24, %v2276_v53  ;;  %1391 = vperm.xlu1 %2041, %v1366_v56  }
 0x821   :  { %v1359_v42 = vpop.xlane.xlu1 %1358 }
 0x822   :  { %1394 = vperm.xlu0 %2040, %v1367_v2   ;;  %v1368_v47 = vadd.f32 %v1359_v42, %v2274_v52 }
 0x823   :  { %v1361_v39 = vpop.xlane.xlu0 %1360 }
 0x824   :  { %v2646_v45 = vadd.f32 %v1361_v39, %v2287_v57  ;;  %1388 = vperm.xlu1 %2041, %v1365_v46  }
 0x826   :  { %1400 = vperm.xlu0 %2040, %v2646_v45  }
 0x828   :  { %1397 = vperm.xlu1 %2041, %v1368_v47  }
 0x897   :  { %v1380_v14 = vpop.permute.xlu1 %1379 }
 0x898   :  { %v1405_v49 = vrot.slane %v1380_v14, %v2172_v15 }
 0x899   :  { %v1383_v5 = vpop.permute.xlu0 %1382 }
 0x89a   :  { %v1409_v53 = vrot.slane %v1383_v5, %v2172_v15 }
 0x89b   :  { %v1386_v4 = vpop.permute.xlu1 %1385 }
 0x89c   :  { %v1413_v13 = vrot.slane %v1386_v4, %v2172_v15  ;;  %v1434_v57 = vsel %vm360_vm0, %v1409_v53, %v1405_v49 }
 0x89e   :  { %v1435_v52 = vsel %vm362_vm1, %v1413_v13, %v1434_v57 }
 0x89f   :  { %v1392_v6 = vpop.permute.xlu1 %1391 }
 0x8a0   :  { %v1421_v37 = vrot.slane %v1392_v6, %v2172_v15 }
 0x8a1   :  { %v1395_v21 = vpop.permute.xlu0 %1394 }
 0x8a2   :  { %v1425_v32 = vrot.slane %v1395_v21, %v2172_v15 }
 0x8a3   :  { %v1389_v59 = vpop.permute.xlu1 %1388 }
 0x8a4   :  { %v1417_v31 = vrot.slane %v1389_v59, %v2172_v15 }
 0x8a5   :  { %v1401_v34 = vpop.permute.xlu0 %1400 }
 0x8a6   :  { %v1436_v30 = vsel %vm364_vm2, %v1417_v31, %v1435_v52  ;;  %v1433_v35 = vrot.slane %v1401_v34, %v2172_v15 }
 0x8a7   :  { %v1437_v62 = vsel %vm366_vm3, %v1421_v37, %v1436_v30  ;;  %v1398_v27 = vpop.permute.xlu1 %1397 }
 0x8a8   :  { %v1429_v55 = vrot.slane %v1398_v27, %v2172_v15  ;;  %v1438_v18 = vsel %vm368_vm4, %v1425_v32, %v1437_v62 }
 0x8aa   :  { %v1439_v36 = vsel %vm370_vm5, %v1429_v55, %v1438_v18 }
 0x8ab   :  { %v1440_v61 = vsel %vm372_vm6, %v1433_v35, %v1439_v36 }
 0x8ac   :  { %v1442_v44 = vsel %vm375_vm7, %v1440_v61, -inf }
 0x8ad   :  { %1443 = vmax.xlane.f32.xlu1 %v1442_v44 }
 0x93a   :  { %v1444_v41 = vpop.xlane.xlu1 %1443 }
 0x93b   :  { %v1449_v7 = vrot.slane %v1444_v41, %v2186_v23  ;;  %v1453_v1 = vrot.slane %v1444_v41, %v2226_v8  ;;  %v1457_v43 = vrot.slane %v1444_v41, %v2233_v11  ;;  %v1461_v60 = vrot.slane %v1444_v41, %v2241_v22 }
 0x93c   :  { %v1465_v0 = vrot.slane %v1444_v41, %v2237_v17  ;;  %v1469_v26 = vrot.slane %v1444_v41, %v2249_v28  ;;  %v1477_v58 = vrot.slane %v1444_v41, %v2830_v9 }
 0x93d   :  { %v1486_v48 = vsub.f32 %v1362_v38, %v1449_v7  ;;  %v1487_v16 = vsub.f32 %v1363_v51, %v1453_v1  ;;  %v1488_v20 = vsub.f32 %v1364_v29, %v1457_v43  ;;  %v1489_v33 = vsub.f32 %v1365_v46, %v1461_v60 }
 0x93e   :  { %v1490_v54 = vsub.f32 %v1366_v56, %v1465_v0  ;;  %v1473_v38 = vrot.slane %v1444_v41, %v2245_v25  ;;  %v1491_v51 = vsub.f32 %v1367_v2, %v1469_v26  ;;  %v1493_v56 = vsub.f32 %v2646_v45, %v1477_v58  ;;  %v2003_v58 = vld [vmem:[%s2754_s0 + $0x60] sm:$0xff]  }
 0x93f   :  { %v1494_v3 = vmul.f32 1.442695, %v1486_v48  ;;  %v1496_v12 = vmul.f32 1.442695, %v1487_v16  ;;  %v1498_v40 = vmul.f32 1.442695, %v1488_v20 }
 0x940   :  { %v1500_v10 = vmul.f32 1.442695, %v1489_v33  ;;  %v1502_v63 = vmul.f32 1.442695, %v1490_v54  ;;  %v1492_v24 = vsub.f32 %v1368_v47, %v1473_v38  ;;  %v1504_v46 = vmul.f32 1.442695, %v1491_v51 }
 0x941   :  { %2087 = vpow2.f32 %v1494_v3  ;;  %v1508_v5 = vmul.f32 1.442695, %v1493_v56  ;;  %v2046_v38 = vld [vmem:[%s2759_s5 + $0x18] sm:$0xff]   ;;  %v2047_v51 = vld [vmem:[%s2759_s5 + $0x20] sm:$0xff]   ;;  %v2005_v56 = vld [vmem:[%s2754_s0 + $0x70] sm:$0xff]  }
 0x942   :  { %2089 = vpow2.f32 %v1496_v12  ;;  %v1506_v39 = vmul.f32 1.442695, %v1492_v24  ;;  %v1972_v24 = vunpack.c.l.bf16 %v2003_v58 }
 0x943   :  { %2091 = vpow2.f32 %v1498_v40 }
 0x944   :  { %2093 = vpow2.f32 %v1500_v10 }
 0x945   :  { %2095 = vpow2.f32 %v1502_v63  ;;  %v2048_v63 = vld [vmem:[%s2759_s5 + $0x28] sm:$0xff]  }
 0x946   :  { %2097 = vpow2.f32 %v1504_v46  ;;  %v1973_v46 = vunpack.c.h.bf16 %v2003_v58 }
 0x947   :  { %2099 = vpow2.f32 %v1506_v39  ;;  %v2831_v39 = vld [vmem:[#allocation3_spill] sm:$0xff] }
 0x948   :  { %2101 = vpow2.f32 %v1508_v5 }
 0x94b   :  { %v2088_v50 = vpop.eup %2087 }
 0x94c   :  { %1519 = vperm.xlu0 %2040, %v2088_v50   ;;  %v2090_v29 = vpop.eup %2089 }
 0x94d   :  { %v2092_v42 = vpop.eup %2091 }
 0x94e   :  { %v2094_v14 = vpop.eup %2093 }
 0x94f   :  { %v2096_v2 = vpop.eup %2095 }
 0x950   :  { %1522 = vperm.xlu0 %2040, %v2090_v29   ;;  %v2098_v4 = vpop.eup %2097 }
 0x951   :  { %v2100_v53 = vpop.eup %2099 }
 0x952   :  { %v2102_v47 = vpop.eup %2101 }
 0x954   :  { %1525 = vperm.xlu0 %2040, %v2092_v42  }
 0x958   :  { %1528 = vperm.xlu0 %2040, %v2094_v14  }
 0x95c   :  { %1531 = vperm.xlu0 %2040, %v2096_v2  }
 0x960   :  { %1534 = vperm.xlu0 %2040, %v2098_v4  }
 0x964   :  { %1537 = vperm.xlu0 %2040, %v2100_v53  }
 0x968   :  { %1540 = vperm.xlu0 %2040, %v2102_v47  }
 0x9cb   :  { %v1520_v6 = vpop.permute.xlu0 %1519 }
 0x9cc   :  { %v1545_v52 = vrot.slane %v1520_v6, %v2172_v15 }
 0x9cf   :  { %v1523_v49 = vpop.permute.xlu0 %1522 }
 0x9d0   :  { %v1549_v59 = vrot.slane %v1523_v49, %v2172_v15 }
 0x9d2   :  { %v1574_v34 = vsel %vm360_vm0, %v1549_v59, %v1545_v52 }
 0x9d3   :  { %v1526_v13 = vpop.permute.xlu0 %1525 }
 0x9d4   :  { %v1553_v31 = vrot.slane %v1526_v13, %v2172_v15 }
 0x9d6   :  { %v1575_v27 = vsel %vm362_vm1, %v1553_v31, %v1574_v34 }
 0x9d7   :  { %v1529_v21 = vpop.permute.xlu0 %1528 }
 0x9d8   :  { %v1557_v37 = vrot.slane %v1529_v21, %v2172_v15  ;;  %v2833_v21 = vld [vmem:[#allocation5_spill] sm:$0xff] }
 0x9da   :  { %v1576_v18 = vsel %vm364_vm2, %v1557_v37, %v1575_v27 }
 0x9db   :  { %v1532_v45 = vpop.permute.xlu0 %1531 }
 0x9dc   :  { %v1561_v32 = vrot.slane %v1532_v45, %v2172_v15 }
 0x9de   :  { %v1577_v35 = vsel %vm366_vm3, %v1561_v32, %v1576_v18 }
 0x9df   :  { %v1535_v57 = vpop.permute.xlu0 %1534 }
 0x9e0   :  { %v1565_v62 = vrot.slane %v1535_v57, %v2172_v15  ;;  %v2834_v57 = vld [vmem:[#allocation6_spill] sm:$0xff] }
 0x9e2   :  { %v1578_v61 = vsel %vm368_vm4, %v1565_v62, %v1577_v35  ;;  %v1981_v62 = vunpack.c.h.bf16 %v2005_v56  ;;  %v2006_v35 = vld [vmem:[%s2754_s0 + $0x78] sm:$0xff]  }
 0x9e3   :  { %v1538_v30 = vpop.permute.xlu0 %1537 }
 0x9e4   :  { %v1569_v55 = vrot.slane %v1538_v30, %v2172_v15 }
 0x9e6   :  { %v1579_v41 = vsel %vm370_vm5, %v1569_v55, %v1578_v61  ;;  %v2835_v55 = vld [vmem:[#allocation7_spill] sm:$0xff] }
 0x9e7   :  { %v1541_v36 = vpop.permute.xlu0 %1540 }
 0x9e8   :  { %v1573_v44 = vrot.slane %v1541_v36, %v2172_v15 }
 0x9ea   :  { %v1580_v7 = vsel %vm372_vm6, %v1573_v44, %v1579_v41 }
 0x9eb   :  { %v1582_v1 = vsel %vm375_vm7, %v1580_v7, 0.0 }
 0x9ec   :  { %1583 = vadd.xlane.f32.xlu0 %v1582_v1  ;;  %v2836_v1 = vld [vmem:[#allocation8_spill] sm:$0xff] }
 0xa79   :  { %v1584_v43 = vpop.xlane.xlu0 %1583 }
 0xa7a   :  { %2103 = vrcp.f32 %v1584_v43  ;;  %v1245_v43 = vadd.f32 %v1981_v62, %v2836_v1 }
 0xa84   :  { %v2104_v48 = vpop.eup %2103 }
 0xa85   :  { %v1606_v16 = vrot.slane %v2104_v48, %v2237_v17  ;;  %v1590_v3 = vrot.slane %v2104_v48, %v2186_v23  ;;  %v1594_v12 = vrot.slane %v2104_v48, %v2226_v8  ;;  %v1598_v0 = vrot.slane %v2104_v48, %v2233_v11  ;;  %v2043_v8 = vld [vmem:[%s2759_s5] sm:$0xff]  }
 0xa86   :  { %v1602_v40 = vrot.slane %v2104_v48, %v2241_v22  ;;  %v1610_v54 = vrot.slane %v2104_v48, %v2249_v28  ;;  %v1614_v23 = vrot.slane %v2104_v48, %v2245_v25  ;;  %v1618_v11 = vrot.slane %v2104_v48, %v2830_v9  ;;  %v2044_v22 = vld [vmem:[%s2759_s5 + $0x8] sm:$0xff]   ;;  %v2045_v25 = vld [vmem:[%s2759_s5 + $0x10] sm:$0xff]   ;;  %v2050_v9 = vld [vmem:[%s2759_s5 + $0x38] sm:$0xff]  }
 0xa87   :  { %v1631_v60 = vmul.f32 %v2096_v2, %v1606_v16  ;;  %v1627_v20 = vmul.f32 %v2088_v50, %v1590_v3  ;;  %v1628_v15 = vmul.f32 %v2090_v29, %v1594_v12  ;;  %v1629_v33 = vmul.f32 %v2092_v42, %v1598_v0  ;;  %v2049_v29 = vld [vmem:[%s2759_s5 + $0x30] sm:$0xff]   ;;  %v2004_v42 = vld [vmem:[%s2754_s0 + $0x68] sm:$0xff]  }
 0xa88   :  { %v1630_v26 = vmul.f32 %v2094_v14, %v1602_v40  ;;  %v1632_v17 = vmul.f32 %v2098_v4, %v1610_v54  ;;  %v1633_v10 = vmul.f32 %v2100_v53, %v1614_v23  ;;  %v2107_v50 = vmov 0.0   ;;  %v2832_v2 = vld [vmem:[#allocation4_spill] sm:$0xff]  ;;  %v2837_v40 = vld [vmem:[#allocation9_spill] sm:$0xff] }
 0xa89   :  { %1657 = vperm.xlu0 %2040, %v1631_v60   ;;  %1637 = vperm.xlu1 %2041, %v1627_v20   ;;  %v1634_v28 = vmul.f32 %v2102_v47, %v1618_v11  ;;  %v1240_v14 = vadd.f32 %v1972_v24, %v2831_v39  ;;  %v1241_v4 = vadd.f32 %v1973_v46, %v2832_v2  ;;  %v1976_v53 = vunpack.c.l.bf16 %v2004_v42 }
 0xa8a   :  { %2016 = vmatprep.subr.bf16.mxu0 %v2107_v50  ;;  %2032 = vmatprep.mubr.msk.bf16.mxu0 %vm2108_vm8, %v2107_v50  ;;  %v1980_v47 = vunpack.c.l.bf16 %v2005_v56  ;;  %v1977_v31 = vunpack.c.h.bf16 %v2004_v42  ;;  %v1984_v48 = vunpack.c.l.bf16 %v2006_v35  ;;  %v1985_v54 = vunpack.c.h.bf16 %v2006_v35 }
 0xa8b   :  { %2017 = vmatpush3.bf16.msra.mxu0 %v2043_v8  ;;  %v1242_v45 = vadd.f32 %v1976_v53, %v2833_v21 }
 0xa8c   :  { %2018 = vmatprep.subr.bf16.mxu0 %v2107_v50  ;;  %v1244_v59 = vadd.f32 %v1980_v47, %v2834_v57  ;;  %v1243_v18 = vadd.f32 %v1977_v31, %v2835_v55 }
 0xa8d   :  { %1642 = vperm.xlu1 %2041, %v1628_v15  }
 0xa8f   :  { %2019 = vmatpush3.bf16.msra.mxu0 %v2044_v22 }
 0xa90   :  { %2020 = vmatprep.subr.bf16.mxu0 %v2107_v50 }
 0xa91   :  { %1647 = vperm.xlu1 %2041, %v1629_v33  }
 0xa93   :  { %2021 = vmatpush3.bf16.msra.mxu0 %v2045_v25 }
 0xa94   :  { %2022 = vmatprep.subr.bf16.mxu0 %v2107_v50 }
 0xa95   :  { %1652 = vperm.xlu1 %2041, %v1630_v26   ;;  %v1246_v26 = vadd.f32 %v1984_v48, %v2837_v40 }
 0xa97   :  { %2023 = vmatpush3.bf16.msra.mxu0 %v2046_v38 }
 0xa98   :  { %2024 = vmatprep.subr.bf16.mxu0 %v2107_v50 }
 0xa99   :  { %1662 = vperm.xlu1 %2041, %v1632_v17  }
 0xa9b   :  { %2025 = vmatpush3.bf16.msra.mxu0 %v2047_v51  ;;  %v2838_v51 = vld [vmem:[#allocation10_spill] sm:$0xff] }
 0xa9c   :  { %2026 = vmatprep.subr.bf16.mxu0 %v2107_v50 }
 0xa9d   :  { %1667 = vperm.xlu1 %2041, %v1633_v10  }
 0xa9f   :  { %2027 = vmatpush3.bf16.msra.mxu0 %v2048_v63  ;;  %v1247_v63 = vadd.f32 %v1985_v54, %v2838_v51 }
 0xaa0   :  { %2028 = vmatprep.subr.bf16.mxu0 %v2107_v50 }
 0xaa1   :  { %1672 = vperm.xlu1 %2041, %v1634_v28  }
 0xaa3   :  { %2029 = vmatpush3.bf16.msra.mxu0 %v2049_v29 }
 0xaa4   :  { %2030 = vmatprep.subr.bf16.mxu0 %v2107_v50 }
 0xaa7   :  { %2031 = vmatpush3.bf16.msra.mxu0 %v2050_v9 }
 0xb08   :  { %v1638_v5 = vpop.permute.xlu1 %1637  ;;  %v1658_v52 = vpop.permute.xlu0 %1657 }
 0xb09   :  { %v1675_v6 = vmul.f32 %v1638_v5, %v1240_v14  ;;  %v1679_v27 = vmul.f32 %v1658_v52, %v1244_v59 }
 0xb0b   :  { %v1683_v32 = vrot.slane %v1675_v6, 4  ;;  %v1707_v16 = vrot.slane %v1679_v27, 4 }
 0xb0c   :  { %v1643_v49 = vpop.permute.xlu1 %1642 }
 0xb0d   :  { %v1676_v13 = vmul.f32 %v1643_v49, %v1241_v4  ;;  %v1684_v44 = vadd.f32 %v1683_v32, %v1675_v6  ;;  %v1708_v17 = vadd.f32 %v1707_v16, %v1679_v27 }
 0xb0f   :  { %v1689_v37 = vrot.slane %v1676_v13, 4  ;;  %v1685_v20 = vrot.slane %v1684_v44, 2  ;;  %v1709_v29 = vrot.slane %v1708_v17, 2 }
 0xb10   :  { %v1648_v30 = vpop.permute.xlu1 %1647 }
 0xb11   :  { %v1677_v34 = vmul.f32 %v1648_v30, %v1242_v45  ;;  %v1690_v36 = vadd.f32 %v1689_v37, %v1676_v13  ;;  %v1686_v11 = vadd.f32 %v1685_v20, %v1684_v44  ;;  %v1710_v53 = vadd.f32 %v1709_v29, %v1708_v17 }
 0xb13   :  { %v1695_v61 = vrot.slane %v1677_v34, 4  ;;  %v1691_v60 = vrot.slane %v1690_v36, 2  ;;  %v1687_v42 = vrot.slane %v1686_v11, 1  ;;  %v1711_v52 = vrot.slane %v1710_v53, 1 }
 0xb14   :  { %v1653_v41 = vpop.permute.xlu1 %1652 }
 0xb15   :  { %v1696_v7 = vadd.f32 %v1695_v61, %v1677_v34  ;;  %v1678_v3 = vmul.f32 %v1653_v41, %v1243_v18  ;;  %v1692_v8 = vadd.f32 %v1691_v60, %v1690_v36  ;;  %v1688_v13 = vadd.f32 %v1687_v42, %v1686_v11 }
 0xb16   :  { %v1712_v18 = vadd.f32 %v1711_v52, %v1710_v53 }
 0xb17   :  { %v1697_v12 = vrot.slane %v1696_v7, 2  ;;  %v1701_v15 = vrot.slane %v1678_v3, 4  ;;  %v1693_v58 = vrot.slane %v1692_v8, 1 }
 0xb18   :  { %v1663_v0 = vpop.permute.xlu1 %1662 }
 0xb19   :  { %v1680_v33 = vmul.f32 %v1663_v0, %v1245_v43  ;;  %v1702_v23 = vadd.f32 %v1701_v15, %v1678_v3  ;;  %v1698_v50 = vadd.f32 %v1697_v12, %v1696_v7  ;;  %v1694_v47 = vadd.f32 %v1693_v58, %v1692_v8 }
 0xb1b   :  { %v1713_v10 = vrot.slane %v1680_v33, 4  ;;  %v1703_v22 = vrot.slane %v1702_v23, 2  ;;  %v1699_v56 = vrot.slane %v1698_v50, 1  ;;  %v1739_v37 = vsel %vm360_vm0, %v1694_v47, %v1688_v13 }
 0xb1c   :  { %v1668_v28 = vpop.permute.xlu1 %1667 }
 0xb1d   :  { %v1714_v25 = vadd.f32 %v1713_v10, %v1680_v33  ;;  %v1681_v38 = vmul.f32 %v1668_v28, %v1246_v26  ;;  %v1704_v9 = vadd.f32 %v1703_v22, %v1702_v23  ;;  %v1700_v21 = vadd.f32 %v1699_v56, %v1698_v50 }
 0xb1f   :  { %v1715_v24 = vrot.slane %v1714_v25, 2  ;;  %v1719_v46 = vrot.slane %v1681_v38, 4  ;;  %v1705_v14 = vrot.slane %v1704_v9, 1  ;;  %v1740_v34 = vsel %vm362_vm1, %v1700_v21, %v1739_v37 }
 0xb20   :  { %v1673_v39 = vpop.permute.xlu1 %1672 }
 0xb21   :  { %v1716_v5 = vadd.f32 %v1715_v24, %v1714_v25  ;;  %v1720_v2 = vadd.f32 %v1719_v46, %v1681_v38  ;;  %v1682_v4 = vmul.f32 %v1673_v39, %v1247_v63  ;;  %v1706_v45 = vadd.f32 %v1705_v14, %v1704_v9 }
 0xb23   :  { %v1721_v6 = vrot.slane %v1720_v2, 2  ;;  %v1725_v49 = vrot.slane %v1682_v4, 4  ;;  %v1717_v57 = vrot.slane %v1716_v5, 1  ;;  %v1741_v62 = vsel %vm364_vm2, %v1706_v45, %v1740_v34 }
 0xb24   :  { %v1742_v61 = vsel %vm366_vm3, %v1712_v18, %v1741_v62 }
 0xb25   :  { %v1722_v59 = vadd.f32 %v1721_v6, %v1720_v2  ;;  %v1726_v31 = vadd.f32 %v1725_v49, %v1682_v4  ;;  %v1718_v27 = vadd.f32 %v1717_v57, %v1716_v5 }
 0xb27   :  { %v1723_v32 = vrot.slane %v1722_v59, 1  ;;  %v1727_v30 = vrot.slane %v1726_v31, 2  ;;  %v1743_v41 = vsel %vm368_vm4, %v1718_v27, %v1742_v61 }
 0xb29   :  { %v1728_v55 = vadd.f32 %v1727_v30, %v1726_v31  ;;  %v1724_v35 = vadd.f32 %v1723_v32, %v1722_v59 }
 0xb2b   :  { %v1729_v36 = vrot.slane %v1728_v55, 1  ;;  %v1744_v7 = vsel %vm370_vm5, %v1724_v35, %v1743_v41 }
 0xb2d   :  { %v1730_v44 = vadd.f32 %v1729_v36, %v1728_v55 }
 0xb2f   :  { %v1745_v1 = vsel %vm372_vm6, %v1730_v44, %v1744_v7 }
 0xb30   :  { %v1747_v43 = vadd.f32 %v1745_v1, %v2596_v19 }
 0xb32   :  { %v1748_v48 = vpack.c.bf16 %v1747_v43, %v1747_v43 }
 0xb34   :  { %2033 = vmatmul.mubr.bf16.vlgmr.msra.gmra.mrb[0].mxu0 %v1748_v48 }
 0xc07   :  { %v1847_v16 = vpop.f32.mrb[0].mxu0 }
 0xc08   :  { %1853 = vst [vmem:[%s2760_s6] sm:$0xff] %v1847_v16  ;;  %v2034_v3 = vpop.f32.mrb[1].mxu0 }
 0xc09   :  { %v1850_v60 = vpop.f32.mrb[2].mxu0 }
 0xc0a   :  { %v2035_v20 = vpop.f32.mrb[3].mxu0 }

</bundles_post_ra>
